<compile_context>
chip_gen: v7x
topology: tpu7x:2x2x1
jax: 0.10.0
libtpu: 0.0.40
codegen_flags: <defaults>
</compile_context>

<pallas_src>
import functools

import jax
import jax.numpy as jnp
from jax.experimental import pallas as pl
from jax.experimental.pallas import tpu as pltpu


# ----------------------------- Pallas kernel ---------------------------------

def mnas_final_kernel(x_ref, hpos_ref, wpos_ref,
                      w_exp_ref, b_exp_ref, w_dw_ref, b_dw_ref,
                      w_pw_ref, b_pw_ref, w2_ref, b2_ref, o_ref,
                      *, H, W, residual):
    # x_ref block: (R, Cin) with R = (images in this block) * H * W NHWC rows.
    R, Cin = x_ref.shape
    C6 = w_exp_ref.shape[1]

    # ---- exp_conv: 1x1 (Cin -> C6) + BN + ReLU (bf16 MXU, f32 accumulate) ----
    x_f32 = x_ref[...]                                          # (R, Cin) f32
    h = jnp.dot(x_f32.astype(jnp.bfloat16), w_exp_ref[...],
                preferred_element_type=jnp.float32)
    h = jnp.maximum(h + b_exp_ref[...], 0.0)                    # (R, C6) f32

    # ---- dw_conv: depthwise 3x3, stride 1, zero pad 1, + BN + ReLU -----------
    # Flattened (R, C6) layout: the 9 taps are rolls along the row (sublane)
    # axis by {0, +-1, +-W, +-(W+-1)} plus boundary masks. Rolls go to the XLU
    # slot and co-issue with the VPU FMAs; no reshapes / pad scratch needed.
    wdw = w_dw_ref[...]                                         # (9, C6): kh*3 + kw
    wt = [wdw[k:k + 1, :] for k in range(9)]                    # hoisted (1, C6)

    h_pos = hpos_ref[...]                                       # (R, 1) int32
    w_pos = wpos_ref[...]                                       # (R, 1) int32
    top = h_pos == 0                                            # source row h-1 invalid
    bot = h_pos == H - 1                                        # source row h+1 invalid
    left = w_pos == 0                                           # source col w-1 invalid
    right = w_pos == W - 1                                      # source col w+1 invalid

    # h-shifted planes (source rows h-1 / h+1), each H-edge-masked exactly once.
    a_m1 = jnp.where(top, 0.0, pltpu.roll(h, shift=W, axis=0))
    a_p1 = jnp.where(bot, 0.0, pltpu.roll(h, shift=(R - W) % R, axis=0))

    # Center column (source col offset 0): acc starts from the first tap.
    acc = h * wt[4]
    acc = acc + a_m1 * wt[1]
    acc = acc + a_p1 * wt[7]

    # Left column (source col w-1): roll rows by +1, single W-edge mask.
    sum_l = pltpu.roll(h, shift=1, axis=0) * wt[3]
    sum_l = sum_l + pltpu.roll(a_m1, shift=1, axis=0) * wt[0]
    sum_l = sum_l + pltpu.roll(a_p1, shift=1, axis=0) * wt[6]
    acc = acc + jnp.where(left, 0.0, sum_l)

    # Right column (source col w+1): roll rows by -1, single W-edge mask.
    sum_r = pltpu.roll(h, shift=R - 1, axis=0) * wt[5]
    sum_r = sum_r + pltpu.roll(a_m1, shift=R - 1, axis=0) * wt[2]
    sum_r = sum_r + pltpu.roll(a_p1, shift=R - 1, axis=0) * wt[8]
    acc = acc + jnp.where(right, 0.0, sum_r)

    hdw = jnp.maximum(acc + b_dw_ref[...], 0.0)                 # (R, C6) f32

    # ---- pw_conv: 1x1 (C6 -> Cmid) + BN, no activation -----------------------
    h2 = jnp.dot(hdw.astype(jnp.bfloat16), w_pw_ref[...],
                 preferred_element_type=jnp.float32) + b_pw_ref[...]

    # ---- residual of conv1 (iff in_channels == mid_channels and use_skip) ----
    if residual:
        h2 = h2 + x_f32

    # ---- conv2: 1x1 (Cmid -> Cout) + BN + ReLU --------------------------------
    y = jnp.dot(h2.astype(jnp.bfloat16), w2_ref[...],
                preferred_element_type=jnp.float32)
    o_ref[...] = jnp.maximum(y + b2_ref[...], 0.0)              # (R, Cout)


# ------------------------------ wrapper ---------------------------------------

def _device_kind():
    try:
        return jax.devices()[0].device_kind.lower()
    except Exception:
        return ""


def _vmem_limit_bytes():
    # v7x has only 64 MiB VMEM per TensorCore (32 MiB scoped default); leave
    # headroom. v5e/v6e have 128 MiB physical.
    if "v7" in _device_kind():
        return 48 * 1024 * 1024
    return 64 * 1024 * 1024


def _choose_num_blocks(n_images, rows_per_image, cin, c6, cout, vmem_budget):
    """Number of grid steps; each step handles a whole number of images."""
    cores = 2 if "v7" in _device_kind() else 1
    target_steps = 8 * cores        # >= several steps per core so DMA pipelines

    def fits(nblk):
        rows = (n_images // nblk) * rows_per_image
        # Rough per-step VMEM: double-buffered in/out blocks plus ~8 live
        # (rows, C6) f32 temporaries in the depthwise stage.
        est = 4 * rows * (2 * cin + 2 * cout + 8 * c6)
        return est <= int(0.6 * vmem_budget)

    best = None
    for d in range(1, n_images + 1):
        if n_images % d != 0 or not fits(d):
            continue
        if best is None or d <= target_steps:
            best = d
    return best if best is not None else n_images


def mnas_final_block(x_nhwc, params, residual, num_row_blocks=None):
    """x_nhwc: (N, H, W, Cin) float32 (channels-last). Returns (N, H, W, Cout)."""
    w_exp, b_exp, w_dw, b_dw, w_pw, b_pw, w2, b2 = params
    x = x_nhwc.astype(jnp.float32)
    N, H, W, Cin = x.shape
    C6 = w_exp.shape[1]
    Cmid = w_pw.shape[1]
    Cout = w2.shape[1]
    if residual:
        assert Cin == Cmid, "residual path requires in_channels == mid_channels"

    vmem_limit = _vmem_limit_bytes()
    if num_row_blocks is None:
        num_row_blocks = _choose_num_blocks(N, H * W, Cin, C6, Cout, vmem_limit)
    assert N % num_row_blocks == 0
    rows_blk = (N // num_row_blocks) * H * W   # whole images per grid step (mult of 8)

    # bf16 weights for the three MXU matmuls (f32 accumulation inside the
    # kernel); depthwise weights and all biases stay f32.
    w_exp_bf = w_exp.astype(jnp.bfloat16)
    w_pw_bf = w_pw.astype(jnp.bfloat16)
    w2_bf = w2.astype(jnp.bfloat16)

    x_flat = x.reshape(N * H * W, Cin)         # contiguous NHWC reshape: free

    # Per-row (h, w) positions for the depthwise boundary masks (tiny int32
    # inputs; avoids in-kernel integer div/mod).
    r = jnp.arange(N * H * W, dtype=jnp.int32)
    h_pos = ((r // W) % H).reshape(-1, 1)
    w_pos = (r % W).reshape(-1, 1)

    out = pl.pallas_call(
        functools.partial(mnas_final_kernel, H=H, W=W, residual=residual),
        out_shape=jax.ShapeDtypeStruct((N * H * W, Cout), jnp.float32),
        grid=(num_row_blocks,),
        in_specs=[
            pl.BlockSpec((rows_blk, Cin), lambda i: (i, 0)),
            pl.BlockSpec((rows_blk, 1), lambda i: (i, 0)),
            pl.BlockSpec((rows_blk, 1), lambda i: (i, 0)),
            pl.BlockSpec((Cin, C6), lambda i: (0, 0)),
            pl.BlockSpec((1, C6), lambda i: (0, 0)),
            pl.BlockSpec((9, C6), lambda i: (0, 0)),
            pl.BlockSpec((1, C6), lambda i: (0, 0)),
            pl.BlockSpec((C6, Cmid), lambda i: (0, 0)),
            pl.BlockSpec((1, Cmid), lambda i: (0, 0)),
            pl.BlockSpec((Cmid, Cout), lambda i: (0, 0)),
            pl.BlockSpec((1, Cout), lambda i: (0, 0)),
        ],
        out_specs=pl.BlockSpec((rows_blk, Cout), lambda i: (i, 0)),
        compiler_params=pltpu.CompilerParams(
            dimension_semantics=("parallel",),
            vmem_limit_bytes=vmem_limit),
    )(x_flat, h_pos, w_pos, w_exp_bf, b_exp, w_dw, b_dw, w_pw_bf, b_pw, w2_bf, b2)

    return out.reshape(N, H, W, Cout)          # contiguous reshape: free


# ----------------------- deterministic parameter setup ------------------------

def _bn_params(key, c):
    k1, k2, k3, k4 = jax.random.split(key, 4)
    gamma = 1.0 + 0.1 * jax.random.normal(k1, (c,), jnp.float32)
    beta = 0.1 * jax.random.normal(k2, (c,), jnp.float32)
    mean = 0.1 * jax.random.normal(k3, (c,), jnp.float32)
    var = 0.5 + jax.random.uniform(k4, (c,), jnp.float32)
    return gamma, beta, mean, var


def _fold_bn(w, bn, eps=1e-5):
    """w: (..., Cout); fold BN (eval mode) into per-output-channel scale/bias."""
    gamma, beta, mean, var = bn
    scale = gamma / jnp.sqrt(var + eps)
    return w * scale[None, :], beta - mean * scale


def make_params(key, in_ch, mid_ch, out_ch):
    c6 = 6 * in_ch
    ks = jax.random.split(key, 8)
    # conv weights laid out (Cin, Cout) for channels-last matmuls
    w_exp = 0.1 * jax.random.normal(ks[0], (in_ch, c6), jnp.float32)
    w_dw = 0.1 * jax.random.normal(ks[1], (9, c6), jnp.float32)      # (kh*3+kw, C)
    w_pw = 0.1 * jax.random.normal(ks[2], (c6, mid_ch), jnp.float32)
    w2 = 0.1 * jax.random.normal(ks[3], (mid_ch, out_ch), jnp.float32)
    # fold BN of each conv block
    w_exp, b_exp = _fold_bn(w_exp, _bn_params(ks[4], c6))
    w_dw, b_dw = _fold_bn(w_dw, _bn_params(ks[5], c6))
    w_pw, b_pw = _fold_bn(w_pw, _bn_params(ks[6], mid_ch))
    w2, b2 = _fold_bn(w2, _bn_params(ks[7], out_ch))
    return (w_exp, b_exp.reshape(1, -1),
            w_dw, b_dw.reshape(1, -1),
            w_pw, b_pw.reshape(1, -1),
            w2, b2.reshape(1, -1))


# ------------------------------ pure-JAX reference ----------------------------

def reference(x_nhwc, params, residual):
    w_exp, b_exp, w_dw, b_dw, w_pw, b_pw, w2, b2 = params
    x = x_nhwc.astype(jnp.float32)
    h = jax.nn.relu(jnp.einsum('nhwc,cd->nhwd', x, w_exp) + b_exp[0])
    c6 = h.shape[-1]
    k = w_dw.reshape(3, 3, c6)[:, :, None, :]                      # HWIO, I=1
    h = jax.lax.conv_general_dilated(
        h, k, window_strides=(1, 1), padding='SAME',
        dimension_numbers=('NHWC', 'HWIO', 'NHWC'), feature_group_count=c6)
    h = jax.nn.relu(h + b_dw[0])
    h = jnp.einsum('nhwc,cd->nhwd', h, w_pw) + b_pw[0]
    if residual:
        h = h + x
    return jax.nn.relu(jnp.einsum('nhwc,cd->nhwd', h, w2) + b2[0])


# ----------------------------------- main --------------------------------------

if __name__ == "__main__":
    # Small shapes consistent with the module: N=8 images (so the row grid has
    # multiple steps and pipelining engages), in_ch=8 (C6=48), H=W=8,
    # mid_channels=8 (== in_ch, so conv1's residual is active), out_channels=16.
    # Data is channels-last (NHWC); PyTorch NCHW callers transpose once outside.
    N, IN_CH, H, W = 8, 8, 8, 8
    MID_CH, OUT_CH = 8, 16
    USE_SKIP = True
    residual = (IN_CH == MID_CH) and USE_SKIP   # stride is 1 in MnasFinalBlock

    key = jax.random.PRNGKey(0)
    kx, kp = jax.random.split(key)
    x = jax.random.normal(kx, (N, H, W, IN_CH), jnp.float32)
    params = make_params(kp, IN_CH, MID_CH, OUT_CH)

    y = jax.block_until_ready(mnas_final_block(x, params, residual))
    y_ref = jax.block_until_ready(reference(x, params, residual))

    assert y.shape == (N, H, W, OUT_CH)
    # bf16 MXU operands (f32 accumulation) vs the all-f32 reference: loosened tol.
    assert jnp.allclose(y, y_ref, rtol=5e-2, atol=5e-2), "mismatch vs JAX reference"

    print("KERNEL_OK")
</pallas_src>

<mosaic_0001>
module attributes {stable_mosaic.version = 11 : i64} {
  func.func @mnas_final_kernel(%arg0: i32, %arg1: memref<64x8xf32, #tpu.memory_space<vmem>>, %arg2: memref<64x1xi32, #tpu.memory_space<vmem>>, %arg3: memref<64x1xi32, #tpu.memory_space<vmem>>, %arg4: memref<8x48xbf16, #tpu.memory_space<vmem>>, %arg5: memref<1x48xf32, #tpu.memory_space<vmem>>, %arg6: memref<9x48xf32, #tpu.memory_space<vmem>>, %arg7: memref<1x48xf32, #tpu.memory_space<vmem>>, %arg8: memref<48x8xbf16, #tpu.memory_space<vmem>>, %arg9: memref<1x8xf32, #tpu.memory_space<vmem>>, %arg10: memref<8x16xbf16, #tpu.memory_space<vmem>>, %arg11: memref<1x16xf32, #tpu.memory_space<vmem>>, %arg12: memref<64x16xf32, #tpu.memory_space<vmem>>) attributes {dimension_semantics = [#tpu.dimension_semantics<parallel>], iteration_bounds = array<i64: 8>, scalar_prefetch = 0 : i64, scratch_operands = 0 : i64, tpu.core_type = #tpu.core_type<tc>, window_params = [{transform_indices = @transform_0, window_bounds = array<i64: 64, 8>}, {transform_indices = @transform_1, window_bounds = array<i64: 64, 1>}, {transform_indices = @transform_2, window_bounds = array<i64: 64, 1>}, {pipeline_mode = #tpu.pipeline_mode<synchronous>, transform_indices = @transform_3, window_bounds = array<i64: 8, 48>}, {pipeline_mode = #tpu.pipeline_mode<synchronous>, transform_indices = @transform_4, window_bounds = array<i64: 1, 48>}, {pipeline_mode = #tpu.pipeline_mode<synchronous>, transform_indices = @transform_5, window_bounds = array<i64: 9, 48>}, {pipeline_mode = #tpu.pipeline_mode<synchronous>, transform_indices = @transform_6, window_bounds = array<i64: 1, 48>}, {pipeline_mode = #tpu.pipeline_mode<synchronous>, transform_indices = @transform_7, window_bounds = array<i64: 48, 8>}, {pipeline_mode = #tpu.pipeline_mode<synchronous>, transform_indices = @transform_8, window_bounds = array<i64: 1, 8>}, {pipeline_mode = #tpu.pipeline_mode<synchronous>, transform_indices = @transform_9, window_bounds = array<i64: 8, 16>}, {pipeline_mode = #tpu.pipeline_mode<synchronous>, transform_indices = @transform_10, window_bounds = array<i64: 1, 16>}, {transform_indices = @transform_11, window_bounds = array<i64: 64, 16>}]} {
    %c0 = arith.constant 0 : index
    %c0_0 = arith.constant 0 : index
    %0 = vector.load %arg1[%c0, %c0_0] : memref<64x8xf32, #tpu.memory_space<vmem>>, vector<64x8xf32>
    %1 = arith.truncf %0 : vector<64x8xf32> to vector<64x8xbf16>
    %c0_1 = arith.constant 0 : index
    %c0_2 = arith.constant 0 : index
    %2 = vector.load %arg4[%c0_1, %c0_2] : memref<8x48xbf16, #tpu.memory_space<vmem>>, vector<8x48xbf16>
    %cst = arith.constant dense<0.000000e+00> : vector<64x48xf32>
    %3 = tpu.matmul %1, %2, %cst {dimension_numbers = #tpu.dot_dimension_numbers<[1], [0], [0], [1], [0, 0, 1, 1], [], []>} : vector<64x8xbf16>, vector<8x48xbf16>, vector<64x48xf32> -> vector<64x48xf32>
    %c0_3 = arith.constant 0 : index
    %c0_4 = arith.constant 0 : index
    %4 = vector.load %arg5[%c0_3, %c0_4] : memref<1x48xf32, #tpu.memory_space<vmem>>, vector<1x48xf32>
    %5 = vector.broadcast %4 : vector<1x48xf32> to vector<64x48xf32>
    %6 = arith.addf %3, %5 : vector<64x48xf32>
    %cst_5 = arith.constant 0.000000e+00 : f32
    %7 = vector.broadcast %cst_5 : f32 to vector<64x48xf32>
    %8 = arith.maximumf %6, %7 : vector<64x48xf32>
    %c0_6 = arith.constant 0 : index
    %c0_7 = arith.constant 0 : index
    %9 = vector.load %arg6[%c0_6, %c0_7] : memref<9x48xf32, #tpu.memory_space<vmem>>, vector<9x48xf32>
    %10 = vector.extract_strided_slice %9 {offsets = [0, 0], sizes = [1, 48], strides = [1, 1]} : vector<9x48xf32> to vector<1x48xf32>
    %11 = vector.extract_strided_slice %9 {offsets = [1, 0], sizes = [1, 48], strides = [1, 1]} : vector<9x48xf32> to vector<1x48xf32>
    %12 = vector.extract_strided_slice %9 {offsets = [2, 0], sizes = [1, 48], strides = [1, 1]} : vector<9x48xf32> to vector<1x48xf32>
    %13 = vector.extract_strided_slice %9 {offsets = [3, 0], sizes = [1, 48], strides = [1, 1]} : vector<9x48xf32> to vector<1x48xf32>
    %14 = vector.extract_strided_slice %9 {offsets = [4, 0], sizes = [1, 48], strides = [1, 1]} : vector<9x48xf32> to vector<1x48xf32>
    %15 = vector.extract_strided_slice %9 {offsets = [5, 0], sizes = [1, 48], strides = [1, 1]} : vector<9x48xf32> to vector<1x48xf32>
    %16 = vector.extract_strided_slice %9 {offsets = [6, 0], sizes = [1, 48], strides = [1, 1]} : vector<9x48xf32> to vector<1x48xf32>
    %17 = vector.extract_strided_slice %9 {offsets = [7, 0], sizes = [1, 48], strides = [1, 1]} : vector<9x48xf32> to vector<1x48xf32>
    %18 = vector.extract_strided_slice %9 {offsets = [8, 0], sizes = [1, 48], strides = [1, 1]} : vector<9x48xf32> to vector<1x48xf32>
    %c0_8 = arith.constant 0 : index
    %c0_9 = arith.constant 0 : index
    %19 = vector.load %arg2[%c0_8, %c0_9] : memref<64x1xi32, #tpu.memory_space<vmem>>, vector<64x1xi32>
    %c0_10 = arith.constant 0 : index
    %c0_11 = arith.constant 0 : index
    %20 = vector.load %arg3[%c0_10, %c0_11] : memref<64x1xi32, #tpu.memory_space<vmem>>, vector<64x1xi32>
    %c0_i32 = arith.constant 0 : i32
    %21 = vector.broadcast %c0_i32 : i32 to vector<64x1xi32>
    %22 = arith.cmpi eq, %19, %21 : vector<64x1xi32>
    %c7_i32 = arith.constant 7 : i32
    %23 = vector.broadcast %c7_i32 : i32 to vector<64x1xi32>
    %24 = arith.cmpi eq, %19, %23 : vector<64x1xi32>
    %c0_i32_12 = arith.constant 0 : i32
    %25 = vector.broadcast %c0_i32_12 : i32 to vector<64x1xi32>
    %26 = arith.cmpi eq, %20, %25 : vector<64x1xi32>
    %c7_i32_13 = arith.constant 7 : i32
    %27 = vector.broadcast %c7_i32_13 : i32 to vector<64x1xi32>
    %28 = arith.cmpi eq, %20, %27 : vector<64x1xi32>
    %c8_i32 = arith.constant 8 : i32
    %29 = tpu.dynamic_rotate %8 by %c8_i32 dim 0 : vector<64x48xf32>, i32 -> vector<64x48xf32>
    %cst_14 = arith.constant 0.000000e+00 : f32
    %30 = vector.shape_cast %22 : vector<64x1xi1> to vector<64x1xi1>
    %31 = vector.broadcast %30 : vector<64x1xi1> to vector<64x48xi1>
    %32 = vector.broadcast %cst_14 : f32 to vector<64x48xf32>
    %33 = arith.select %31, %32, %29 : vector<64x48xi1>, vector<64x48xf32>
    %c56_i32 = arith.constant 56 : i32
    %34 = tpu.dynamic_rotate %8 by %c56_i32 dim 0 : vector<64x48xf32>, i32 -> vector<64x48xf32>
    %cst_15 = arith.constant 0.000000e+00 : f32
    %35 = vector.shape_cast %24 : vector<64x1xi1> to vector<64x1xi1>
    %36 = vector.broadcast %35 : vector<64x1xi1> to vector<64x48xi1>
    %37 = vector.broadcast %cst_15 : f32 to vector<64x48xf32>
    %38 = arith.select %36, %37, %34 : vector<64x48xi1>, vector<64x48xf32>
    %39 = vector.broadcast %14 : vector<1x48xf32> to vector<64x48xf32>
    %40 = arith.mulf %8, %39 : vector<64x48xf32>
    %41 = vector.broadcast %11 : vector<1x48xf32> to vector<64x48xf32>
    %42 = arith.mulf %33, %41 : vector<64x48xf32>
    %43 = arith.addf %40, %42 : vector<64x48xf32>
    %44 = vector.broadcast %17 : vector<1x48xf32> to vector<64x48xf32>
    %45 = arith.mulf %38, %44 : vector<64x48xf32>
    %46 = arith.addf %43, %45 : vector<64x48xf32>
    %c1_i32 = arith.constant 1 : i32
    %47 = tpu.dynamic_rotate %8 by %c1_i32 dim 0 : vector<64x48xf32>, i32 -> vector<64x48xf32>
    %48 = vector.broadcast %13 : vector<1x48xf32> to vector<64x48xf32>
    %49 = arith.mulf %47, %48 : vector<64x48xf32>
    %c1_i32_16 = arith.constant 1 : i32
    %50 = tpu.dynamic_rotate %33 by %c1_i32_16 dim 0 : vector<64x48xf32>, i32 -> vector<64x48xf32>
    %51 = vector.broadcast %10 : vector<1x48xf32> to vector<64x48xf32>
    %52 = arith.mulf %50, %51 : vector<64x48xf32>
    %53 = arith.addf %49, %52 : vector<64x48xf32>
    %c1_i32_17 = arith.constant 1 : i32
    %54 = tpu.dynamic_rotate %38 by %c1_i32_17 dim 0 : vector<64x48xf32>, i32 -> vector<64x48xf32>
    %55 = vector.broadcast %16 : vector<1x48xf32> to vector<64x48xf32>
    %56 = arith.mulf %54, %55 : vector<64x48xf32>
    %57 = arith.addf %53, %56 : vector<64x48xf32>
    %cst_18 = arith.constant 0.000000e+00 : f32
    %58 = vector.shape_cast %26 : vector<64x1xi1> to vector<64x1xi1>
    %59 = vector.broadcast %58 : vector<64x1xi1> to vector<64x48xi1>
    %60 = vector.broadcast %cst_18 : f32 to vector<64x48xf32>
    %61 = arith.select %59, %60, %57 : vector<64x48xi1>, vector<64x48xf32>
    %62 = arith.addf %46, %61 : vector<64x48xf32>
    %c63_i32 = arith.constant 63 : i32
    %63 = tpu.dynamic_rotate %8 by %c63_i32 dim 0 : vector<64x48xf32>, i32 -> vector<64x48xf32>
    %64 = vector.broadcast %15 : vector<1x48xf32> to vector<64x48xf32>
    %65 = arith.mulf %63, %64 : vector<64x48xf32>
    %c63_i32_19 = arith.constant 63 : i32
    %66 = tpu.dynamic_rotate %33 by %c63_i32_19 dim 0 : vector<64x48xf32>, i32 -> vector<64x48xf32>
    %67 = vector.broadcast %12 : vector<1x48xf32> to vector<64x48xf32>
    %68 = arith.mulf %66, %67 : vector<64x48xf32>
    %69 = arith.addf %65, %68 : vector<64x48xf32>
    %c63_i32_20 = arith.constant 63 : i32
    %70 = tpu.dynamic_rotate %38 by %c63_i32_20 dim 0 : vector<64x48xf32>, i32 -> vector<64x48xf32>
    %71 = vector.broadcast %18 : vector<1x48xf32> to vector<64x48xf32>
    %72 = arith.mulf %70, %71 : vector<64x48xf32>
    %73 = arith.addf %69, %72 : vector<64x48xf32>
    %cst_21 = arith.constant 0.000000e+00 : f32
    %74 = vector.shape_cast %28 : vector<64x1xi1> to vector<64x1xi1>
    %75 = vector.broadcast %74 : vector<64x1xi1> to vector<64x48xi1>
    %76 = vector.broadcast %cst_21 : f32 to vector<64x48xf32>
    %77 = arith.select %75, %76, %73 : vector<64x48xi1>, vector<64x48xf32>
    %78 = arith.addf %62, %77 : vector<64x48xf32>
    %c0_22 = arith.constant 0 : index
    %c0_23 = arith.constant 0 : index
    %79 = vector.load %arg7[%c0_22, %c0_23] : memref<1x48xf32, #tpu.memory_space<vmem>>, vector<1x48xf32>
    %80 = vector.broadcast %79 : vector<1x48xf32> to vector<64x48xf32>
    %81 = arith.addf %78, %80 : vector<64x48xf32>
    %cst_24 = arith.constant 0.000000e+00 : f32
    %82 = vector.broadcast %cst_24 : f32 to vector<64x48xf32>
    %83 = arith.maximumf %81, %82 : vector<64x48xf32>
    %84 = arith.truncf %83 : vector<64x48xf32> to vector<64x48xbf16>
    %c0_25 = arith.constant 0 : index
    %c0_26 = arith.constant 0 : index
    %85 = vector.load %arg8[%c0_25, %c0_26] : memref<48x8xbf16, #tpu.memory_space<vmem>>, vector<48x8xbf16>
    %cst_27 = arith.constant dense<0.000000e+00> : vector<64x8xf32>
    %86 = tpu.matmul %84, %85, %cst_27 {dimension_numbers = #tpu.dot_dimension_numbers<[1], [0], [0], [1], [0, 0, 1, 1], [], []>} : vector<64x48xbf16>, vector<48x8xbf16>, vector<64x8xf32> -> vector<64x8xf32>
    %c0_28 = arith.constant 0 : index
    %c0_29 = arith.constant 0 : index
    %87 = vector.load %arg9[%c0_28, %c0_29] : memref<1x8xf32, #tpu.memory_space<vmem>>, vector<1x8xf32>
    %88 = vector.broadcast %87 : vector<1x8xf32> to vector<64x8xf32>
    %89 = arith.addf %86, %88 : vector<64x8xf32>
    %90 = arith.addf %89, %0 : vector<64x8xf32>
    %91 = arith.truncf %90 : vector<64x8xf32> to vector<64x8xbf16>
    %c0_30 = arith.constant 0 : index
    %c0_31 = arith.constant 0 : index
    %92 = vector.load %arg10[%c0_30, %c0_31] : memref<8x16xbf16, #tpu.memory_space<vmem>>, vector<8x16xbf16>
    %cst_32 = arith.constant dense<0.000000e+00> : vector<64x16xf32>
    %93 = tpu.matmul %91, %92, %cst_32 {dimension_numbers = #tpu.dot_dimension_numbers<[1], [0], [0], [1], [0, 0, 1, 1], [], []>} : vector<64x8xbf16>, vector<8x16xbf16>, vector<64x16xf32> -> vector<64x16xf32>
    %c0_33 = arith.constant 0 : index
    %c0_34 = arith.constant 0 : index
    %94 = vector.load %arg11[%c0_33, %c0_34] : memref<1x16xf32, #tpu.memory_space<vmem>>, vector<1x16xf32>
    %95 = vector.broadcast %94 : vector<1x16xf32> to vector<64x16xf32>
    %96 = arith.addf %93, %95 : vector<64x16xf32>
    %cst_35 = arith.constant 0.000000e+00 : f32
    %97 = vector.broadcast %cst_35 : f32 to vector<64x16xf32>
    %98 = arith.maximumf %96, %97 : vector<64x16xf32>
    %c0_36 = arith.constant 0 : index
    %c0_37 = arith.constant 0 : index
    %99 = vector.load %arg12[%c0_36, %c0_37] : memref<64x16xf32, #tpu.memory_space<vmem>>, vector<64x16xf32>
    tpu.vector_store %arg12[%c0_36, %c0_37], %98 {strides = array<i32>} : memref<64x16xf32, #tpu.memory_space<vmem>>, vector<64x16xf32>,
    return
  }
  func.func @transform_0(%arg0: i32) -> (i32, i32) {
    %c0_i32 = arith.constant 0 : i32
    %c0_i32_0 = arith.constant 0 : i32
    return %arg0, %c0_i32 : i32, i32
  }
  func.func @transform_1(%arg0: i32) -> (i32, i32) {
    %c0_i32 = arith.constant 0 : i32
    %c0_i32_0 = arith.constant 0 : i32
    return %arg0, %c0_i32 : i32, i32
  }
  func.func @transform_2(%arg0: i32) -> (i32, i32) {
    %c0_i32 = arith.constant 0 : i32
    %c0_i32_0 = arith.constant 0 : i32
    return %arg0, %c0_i32 : i32, i32
  }
  func.func @transform_3(%arg0: i32) -> (i32, i32) {
    %c0_i32 = arith.constant 0 : i32
    %c0_i32_0 = arith.constant 0 : i32
    %c0_i32_1 = arith.constant 0 : i32
    return %c0_i32, %c0_i32_0 : i32, i32
  }
  func.func @transform_4(%arg0: i32) -> (i32, i32) {
    %c0_i32 = arith.constant 0 : i32
    %c0_i32_0 = arith.constant 0 : i32
    %c0_i32_1 = arith.constant 0 : i32
    return %c0_i32, %c0_i32_0 : i32, i32
  }
  func.func @transform_5(%arg0: i32) -> (i32, i32) {
    %c0_i32 = arith.constant 0 : i32
    %c0_i32_0 = arith.constant 0 : i32
    %c0_i32_1 = arith.constant 0 : i32
    return %c0_i32, %c0_i32_0 : i32, i32
  }
  func.func @transform_6(%arg0: i32) -> (i32, i32) {
    %c0_i32 = arith.constant 0 : i32
    %c0_i32_0 = arith.constant 0 : i32
    %c0_i32_1 = arith.constant 0 : i32
    return %c0_i32, %c0_i32_0 : i32, i32
  }
  func.func @transform_7(%arg0: i32) -> (i32, i32) {
    %c0_i32 = arith.constant 0 : i32
    %c0_i32_0 = arith.constant 0 : i32
    %c0_i32_1 = arith.constant 0 : i32
    return %c0_i32, %c0_i32_0 : i32, i32
  }
  func.func @transform_8(%arg0: i32) -> (i32, i32) {
    %c0_i32 = arith.constant 0 : i32
    %c0_i32_0 = arith.constant 0 : i32
    %c0_i32_1 = arith.constant 0 : i32
    return %c0_i32, %c0_i32_0 : i32, i32
  }
  func.func @transform_9(%arg0: i32) -> (i32, i32) {
    %c0_i32 = arith.constant 0 : i32
    %c0_i32_0 = arith.constant 0 : i32
    %c0_i32_1 = arith.constant 0 : i32
    return %c0_i32, %c0_i32_0 : i32, i32
  }
  func.func @transform_10(%arg0: i32) -> (i32, i32) {
    %c0_i32 = arith.constant 0 : i32
    %c0_i32_0 = arith.constant 0 : i32
    %c0_i32_1 = arith.constant 0 : i32
    return %c0_i32, %c0_i32_0 : i32, i32
  }
  func.func @transform_11(%arg0: i32) -> (i32, i32) {
    %c0_i32 = arith.constant 0 : i32
    %c0_i32_0 = arith.constant 0 : i32
    return %arg0, %c0_i32 : i32, i32
  }
}

</mosaic_0001>

<bundles_post_ra>
// kernel: tpu_custom_call.1
= control target key start
LH: loop header
LB: loop body
LE: loop exit
PB: predicated region body
PF: predicated region fallthrough
CT: control target
= control target key end

     0   :  { %s3709_s0 = inlined_call_operand.hbm [shape: f32[512,8], index: 0, kind: input, shape index: {}]   ;;  %s3710_s1 = inlined_call_operand.hbm [shape: s32[512,1], index: 1, kind: input, shape index: {}]   ;;  %s3711_s2 = inlined_call_operand.hbm [shape: s32[512,1], index: 2, kind: input, shape index: {}]   ;;  %s3712_s3 = inlined_call_operand.hbm [shape: bf16[8,48], index: 3, kind: input, shape index: {}]   ;;  %s3713_s4 = inlined_call_operand.hbm [shape: f32[1,48], index: 4, kind: input, shape index: {}]   ;;  %s3714_s5 = inlined_call_operand.hbm [shape: f32[9,48], index: 5, kind: input, shape index: {}]   ;;  %s3715_s6 = inlined_call_operand.hbm [shape: f32[1,48], index: 6, kind: input, shape index: {}]   ;;  %s3716_s7 = inlined_call_operand.hbm [shape: bf16[48,8], index: 7, kind: input, shape index: {}]   ;;  %s3717_s8 = inlined_call_operand.hbm [shape: f32[1,8], index: 8, kind: input, shape index: {}]   ;;  %s3718_s9 = inlined_call_operand.hbm [shape: bf16[8,16], index: 9, kind: input, shape index: {}]   ;;  %s3719_s10 = inlined_call_operand.hbm [shape: f32[1,16], index: 10, kind: input, shape index: {}]   ;;  %s3720_s11 = inlined_call_operand.hbm [shape: f32[512,16], index: 11, kind: output, shape index: {}]  }
   0x1   :  { %3764 = sst [smem:[#allocation54_spill]] %s3710_s1 }
   0x2   :  { %3765 = sst [smem:[#allocation55_spill]] %s3712_s3 }
   0x3   :  { %3766 = sst [smem:[#allocation56_spill]] %s3714_s5 }
   0x4   :  { %3767 = sst [smem:[#allocation57_spill]] %s3716_s7 }
   0x5   :  { %3768 = sst [smem:[#allocation58_spill]] %s3718_s9 }
   0x6   :  { %3769 = sst [smem:[#allocation59_spill]] %s3720_s11 }
   0x7   :  { %16 = vsyncpa [#allocation3], 0 }
   0x8   :  { %18 = vsyncpa [#allocation3 + $0x1], 0 }
   0x9   :  { %19 = vsyncpa [#allocation6], 0 }
   0xa   :  { %21 = vsyncpa [#allocation6 + $0x1], 0 }
   0xb   :  { %22 = vsyncpa [#allocation9], 0 }
   0xc   :  { %23 = vsyncpa [#allocation12], 0 }
   0xd   :  { %24 = vsyncpa [#allocation15], 0 }
   0xe   :  { %25 = vsyncpa [#allocation18], 0 }
   0xf   :  { %26 = vsyncpa [#allocation4], 0 }
  0x10   :  { %28 = vsyncpa [#allocation4 + $0x1], 0  ;;  %s2430_s17 = smov 0   ;;  %s2432_s18 = smov 0  }
  0x11   :  { %s2434_s19 = smov 0   ;;  %s2436_s20 = smov 0  }
  0x12 LB: > { %3770 = sst [smem:[#allocation28_spill]] %s2337_s17  ;;  %s2351_s21 = smov [#allocation8]   ;;  %s2349_s20 = sphi %s2436_s20, %s3912_s20   ;;  %s2345_s19 = sphi %s2434_s19, %s3916_s19   ;;  %s2341_s18 = sphi %s2432_s18, %s3915_s18   ;;  %s2337_s17 = sphi %s2430_s17, %s3914_s17  }
  0x13   : > { %3771 = sst [smem:[#allocation29_spill]] %s2349_s20  ;;  %s324_s22 = sshll.u32 %s2351_s21, 4  ;;  %s325_s22 = int_to_ptr.vmem [resolvable:$true] %s324_s22 }
  0x14   : > { %s2451_s23 = sadd.s32 4294967295, %s2349_s20   ;;  %p1675_p0 = scmp.ge.s32.totalorder %s2349_s20, 1 }
  0x15   : > { %3772 = sst [smem:[#allocation30_spill]] %s2451_s23  ;;  %p3721_p1 = scmp.eq.s32.totalorder %s2451_s23, 0 }
  0x16   : > { %p311_p2 = scmp.lt.s32.totalorder %s2349_s20, 9  ;;  %s2352_s25 = smov [#allocation11]  }
  0x17   : > { %s345_s26 = sshll.u32 %s2352_s25, 4  ;;  %s2353_s28 = smov [#allocation14]   ;;  %s2462_s26 = int_to_ptr.vmem [resolvable:$true] %s345_s26 }
  0x18   : > { %p2456_p3 = pnand %p1675_p0, %p311_p2  ;;  %s369_s29 = sshll.u32 %s2353_s28, 4  ;;  %s2470_s29 = int_to_ptr.vmem [resolvable:$true] %s369_s29 }
  0x19   : > { %s3775_s3 = sld [smem:[#allocation55_spill]] }
  0x1a   : > { %s3773_s24 = scalar_select %p2456_p3, 1, 0 }
  0x1b   : > { %p1832_p4 = pneg %p2456_p3 }
  0x1d   : > { %p2466_p5 = pnand %p1832_p4, %p3721_p1 }
  0x1f   : > { %s3774_s27 = scalar_select %p2466_p5, 1, 0 }
  0x20   : > { %s1949_s13 = scalar_lea.hbm %s3775_s3, 64  ;;  %p2480_p7 = pneg %p2466_p5 }
  0x21   : > { %p1950_p6 = scmp.ne.s32.totalorder %s3775_s3, %s1949_s13  ;;  %p1956_p10 = scmp.lt.u32.totalorder %s1949_s13, %s3775_s3 }
  0x22   : > { %s3776_s16 = scalar_select %p2480_p7, 1, 0 }
  0x23   : > { %p1952_p8 = pnand %p2480_p7, %p1950_p6 }
  0x25   : > { %p1953_p9 = pneg %p1952_p8 }
  0x27   : > { %p1958_p11 = pnand %p1956_p10, %p1953_p9 }
  0x29   : > { %1961 = shalt.err (!%p1958_p11)
}
  0x2a   : > { %s1962_s28 = scalar_lea.vmem %s325_s22, 64  ;;  %p1970_p2 = scmp.lt.s32.totalorder %s325_s22, %s325_s22 }
  0x2b   : > { %p1963_p12 = scmp.ne.s32.totalorder %s325_s22, %s1962_s28  ;;  %p1971_p4 = scmp.lt.s32.totalorder %s1962_s28, %s1962_s28 }
  0x2d   : > { %p1965_p13 = pnand %p1963_p12, %p2480_p7  ;;  %p1972_p1 = por %p1971_p4, %p1970_p2 }
  0x2f   : > { %p1966_p0 = pneg %p1965_p13 }
  0x31   : > { %p1973_p3 = pnand %p1972_p1, %p1966_p0 }
  0x33   : > { %1976 = shalt.err (!%p1973_p3)
}
  0x34   : > { %1835 = dma.hbm_to_vmem [thread:$0]  (!%p2466_p5), %s3775_s3, 64, %s325_s22, [#allocation9]  }
  0x35   : > { %s3777_s5 = sld [smem:[#allocation56_spill]] }
  0x3b   : > { %s1977_s15 = scalar_lea.hbm %s3777_s5, 256 }
  0x3c   : > { %p1978_p6 = scmp.ne.s32.totalorder %s3777_s5, %s1977_s15  ;;  %p1984_p1 = scmp.lt.u32.totalorder %s1977_s15, %s3777_s5 }
  0x3e   : > { %p1980_p8 = pnand %p1978_p6, %p2480_p7 }
  0x40   : > { %p1981_p9 = pneg %p1980_p8 }
  0x42   : > { %p1986_p3 = pnand %p1984_p1, %p1981_p9 }
  0x44   : > { %1989 = shalt.err (!%p1986_p3)
}
  0x45   : > { %s1990_s22 = scalar_lea.vmem %s2462_s26, 256  ;;  %p1998_p13 = scmp.lt.s32.totalorder %s2462_s26, %s2462_s26 }
  0x46   : > { %p1991_p10 = scmp.ne.s32.totalorder %s2462_s26, %s1990_s22  ;;  %p1999_p0 = scmp.lt.s32.totalorder %s1990_s22, %s1990_s22 }
  0x48   : > { %p1993_p11 = pnand %p1991_p10, %p2480_p7  ;;  %p2000_p2 = por %p1999_p0, %p1998_p13 }
  0x4a   : > { %p1994_p12 = pneg %p1993_p11 }
  0x4c   : > { %p2001_p4 = pnand %p2000_p2, %p1994_p12 }
  0x4e   : > { %2004 = shalt.err (!%p2001_p4)
}
  0x4f   : > { %s3724_s30 = smov 128   ;;  %s3726_s11 = smov 8  }
  0x50   : > { %1841 = dma.hbm_to_vmem [thread:$0]  (!%p2466_p5), %s3777_s5, 256, %s2462_s26, [#allocation12], %s3724_s30, %s3724_s30, %s3726_s11  }
  0x51   : > { %s3778_s7 = sld [smem:[#allocation57_spill]] }
  0x57   : > { %s2005_s21 = scalar_lea.hbm %s3778_s7, 384 }
  0x58   : > { %p2006_p6 = scmp.ne.s32.totalorder %s3778_s7, %s2005_s21  ;;  %p2012_p1 = scmp.lt.u32.totalorder %s2005_s21, %s3778_s7 }
  0x5a   : > { %p2008_p8 = pnand %p2006_p6, %p2480_p7 }
  0x5c   : > { %p2009_p9 = pneg %p2008_p8 }
  0x5e   : > { %p2014_p3 = pnand %p2012_p1, %p2009_p9 }
  0x60   : > { %2017 = shalt.err (!%p2014_p3)
}
  0x61   : > { %s2018_s26 = scalar_lea.vmem %s2470_s29, 384  ;;  %p2026_p13 = scmp.lt.s32.totalorder %s2470_s29, %s2470_s29 }
  0x62   : > { %p2019_p10 = scmp.ne.s32.totalorder %s2470_s29, %s2018_s26  ;;  %p2027_p0 = scmp.lt.s32.totalorder %s2018_s26, %s2018_s26 }
  0x64   : > { %p2021_p11 = pnand %p2019_p10, %p2480_p7  ;;  %p2028_p2 = por %p2027_p0, %p2026_p13 }
  0x66   : > { %p2022_p12 = pneg %p2021_p11 }
  0x68   : > { %p2029_p4 = pnand %p2028_p2, %p2022_p12 }
  0x6a   : > { %2032 = shalt.err (!%p2029_p4)
}
  0x6b   : > { %s2356_s12 = smov 64   ;;  %s2357_s3 = smov 4  }
  0x6c   : > { %1847 = dma.hbm_to_vmem [thread:$0]  (!%p2466_p5), %s3778_s7, 384, %s2470_s29, [#allocation15], %s2356_s12, %s2356_s12, %s2357_s3  }
  0x6d   : > { %s2358_s15 = smov [#allocation17]   ;;  %s3779_s9 = sld [smem:[#allocation58_spill]] }
  0x6e   : > { %s394_s21 = sshll.u32 %s2358_s15, 4  ;;  %s395_s21 = int_to_ptr.vmem [resolvable:$true] %s394_s21 }
  0x73   : > { %s2033_s22 = scalar_lea.hbm %s3779_s9, 64 }
  0x74   : > { %p2034_p6 = scmp.ne.s32.totalorder %s3779_s9, %s2033_s22  ;;  %p2040_p1 = scmp.lt.u32.totalorder %s2033_s22, %s3779_s9 }
  0x76   : > { %p2036_p8 = pnand %p2034_p6, %p2480_p7 }
  0x78   : > { %p2037_p9 = pneg %p2036_p8 }
  0x7a   : > { %p2042_p3 = pnand %p2040_p1, %p2037_p9 }
  0x7c   : > { %2045 = shalt.err (!%p2042_p3)
}
  0x7d   : > { %s2046_s29 = scalar_lea.vmem %s395_s21, 64  ;;  %p2054_p13 = scmp.lt.s32.totalorder %s395_s21, %s395_s21 }
  0x7e   : > { %p2047_p10 = scmp.ne.s32.totalorder %s395_s21, %s2046_s29  ;;  %p2055_p0 = scmp.lt.s32.totalorder %s2046_s29, %s2046_s29 }
  0x80   : > { %p2049_p11 = pnand %p2047_p10, %p2480_p7  ;;  %p2056_p2 = por %p2055_p0, %p2054_p13 }
  0x82   : > { %p2050_p12 = pneg %p2049_p11 }
  0x84   : > { %p2057_p4 = pnand %p2056_p2, %p2050_p12 }
  0x86   : > { %2060 = shalt.err (!%p2057_p4)
}
  0x87   : > { %1853 = dma.hbm_to_vmem [thread:$0]  (!%p2466_p5), %s3779_s9, 64, %s395_s21, [#allocation18]  }
  0x88   : > { %s1674_s5 = sadd.s32 4294967294, %s2349_s20   ;;  %s2565_s11 = sadd.s32 1, %s2349_s20  }
  0x89   : > { %3780 = sst [smem:[#allocation31_spill]] %s2565_s11  ;;  %s38_s3 = ssub.s32 %s2349_s20, %s2565_s11 }
  0x8a   : > { %s41_s13 = sadd.s32 1, %s2345_s19  ;;  %p39_p6 = scmp.eq.s32.totalorder %s38_s3, 0 }
  0x8b   : > { %p48_p8 = scmp.ne.s32.totalorder %s2345_s19, %s2341_s18  ;;  %p49_p9 = scmp.eq.s32.totalorder %s2349_s20, 0 }
  0x8c   : > { %p54_p1 = scmp.ne.s32.totalorder %s2341_s18, %s2337_s17  ;;  %p3782_p10 = scmp.eq.s32.totalorder %s2451_s23, 0 }
  0x8d   : > { %s2576_s14 = scalar_select %p39_p6, %s2345_s19, %s41_s13  }
  0x8e   : > { %p50_p3 = por %p49_p9, %p48_p8  ;;  %p2580_p11 = por %p3782_p10, %p54_p1 }
  0x8f   : > { %3781 = sst [smem:[#allocation32_spill]] %s2576_s14  ;;  %p298_p12 = scmp.eq.s32.totalorder %s2451_s23, 7 }
  0x90   : > { %s3783_s15 = scalar_select %p2580_p11, 1, 0 }
  0x91   : > { %p304_p13 = scmp.eq.s32.totalorder %s1674_s5, 7  ;;  %p1879_p0 = scmp.lt.s32.totalorder %s2349_s20, 8 }
  0x92   : > { %3784 = sst [smem:[#allocation33_spill]] %s3783_s15  ;;  %s3728_s21 = sand.u32 1, %s2345_s19  }
  0x93   : > { %p2587_p2 = por %p298_p12, %p48_p8  ;;  %p2591_p4 = por %p304_p13, %p54_p1 }
  0x94   : > { %s2597_s22 = sshll.u32 %s3728_s21, 6  ;;  %s2600_s26 = sshll.u32 %s2349_s20, 10 }
  0x95   : > { %s3785_s25 = scalar_select %p2587_p2, 1, 0 }
  0x96   : > { %s3787_s28 = scalar_select %p2591_p4, 1, 0 }
  0x97   : > { %3786 = sst [smem:[#allocation34_spill]] %s3785_s25  ;;  %p2602_p6 = pnand %p1879_p0, %p50_p3 }
  0x98   : > { %3788 = sst [smem:[#allocation35_spill]] %s3787_s28  ;;  %s437_s30 = sand.u32 1, %s2349_s20  }
  0x99   : > { %s3789_s29 = scalar_select %p2602_p6, 1, 0 }
  0x9a   : > { %s3790_s1 = sld [smem:[#allocation54_spill]]  ;;  %s441_s13 = scalar_lea.vmem [#allocation5], %s2597_s22 }
  0x9b   : > { %s448_s21 = sshll.u32 %s441_s13, 4  ;;  %s2359_s7 = smov [#allocation10]   ;;  %s2614_s21 = int_to_ptr.vmem [resolvable:$true] %s448_s21 }
  0x9c   : > { %s2616_s9 = sshll.u32 %s2359_s7, 4  ;;  %s2618_s14 = scalar_lea.sflag [#allocation6], %s437_s30  ;;  %s336_s9 = int_to_ptr.vmem [resolvable:$true] %s2616_s9 }
  0x9d   : > { %p2624_p9 = pneg %p2602_p6 }
  0x9f   : > { %s3791_s12 = scalar_select %p2624_p9, 1, 0 }
  0xa0   : > { %s2611_s3 = scalar_lea.hbm %s3790_s1, %s2600_s26  ;;  %s2066_s28 = scalar_lea.hbm %s3790_s1, 8192 }
  0xa1   : > { %s2061_s11 = scalar_lea.hbm %s2611_s3, 1024  ;;  %p2067_p10 = scmp.lt.u32.totalorder %s2611_s3, %s3790_s1 }
  0xa2   : > { %p2062_p8 = scmp.ne.s32.totalorder %s2611_s3, %s2061_s11  ;;  %p2068_p12 = scmp.lt.u32.totalorder %s2066_s28, %s2061_s11 }
  0xa3   : > { %p2070_p0 = scmp.lt.u32.totalorder %s2061_s11, %s2611_s3 }
  0xa4   : > { %p2064_p1 = pnand %p2624_p9, %p2062_p8  ;;  %p2069_p13 = por %p2068_p12, %p2067_p10 }
  0xa6   : > { %p2065_p3 = pneg %p2064_p1  ;;  %p2071_p4 = por %p2070_p0, %p2069_p13 }
  0xa8   : > { %p2072_p2 = pnand %p2071_p4, %p2065_p3 }
  0xaa   : > { %2075 = shalt.err (!%p2072_p2)
}
  0xab   : > { %s2076_s30 = scalar_lea.vmem %s2614_s21, 1024  ;;  %s2360_s5 = smov [#allocation5]  }
  0xac   : > { %p2077_p8 = scmp.ne.s32.totalorder %s2614_s21, %s2076_s30  ;;  %s2081_s13 = sshll.u32 %s2360_s5, 4  ;;  %s2082_s13 = int_to_ptr.vmem [resolvable:$false] %s2081_s13 }
  0xad   : > { %s2083_s17 = scalar_lea.vmem %s2082_s13, 2048  ;;  %p2084_p5 = scmp.lt.s32.totalorder %s2614_s21, %s2082_s13 }
  0xae   : > { %p2079_p1 = pnand %p2077_p8, %p2624_p9  ;;  %p2085_p7 = scmp.lt.s32.totalorder %s2083_s17, %s2076_s30 }
  0xb0   : > { %p2080_p11 = pneg %p2079_p1  ;;  %p2086_p10 = por %p2085_p7, %p2084_p5 }
  0xb2   : > { %p2087_p12 = pnand %p2086_p10, %p2080_p11 }
  0xb4   : > { %2090 = shalt.err (!%p2087_p12)
}
  0xb5   : > { %s3792_s11 = smov 8   ;;  %s3793_s28 = smov 128  }
  0xb6   : > { %1863 = dma.hbm_to_vmem [thread:$0]  (!%p2602_p6), %s2611_s3, 1024, %s2614_s21, %s2618_s14, %s3793_s28, %s3793_s28, %s3792_s11  }
  0xb7   : > { %s2091_s13 = scalar_lea.hbm %s3713_s4, 16  ;;  %p3794_p7 = scmp.ne.s32.totalorder %s3776_s16, 0 }
  0xb8   : > { %p2092_p5 = scmp.ne.s32.totalorder %s3713_s4, %s2091_s13  ;;  %p2098_p4 = scmp.lt.u32.totalorder %s2091_s13, %s3713_s4 }
  0xba   : > { %p2094_p11 = pnand %p2092_p5, %p3794_p7 }
  0xbc   : > { %p2095_p2 = pneg %p2094_p11 }
  0xbe   : > { %p2100_p3 = pnand %p2098_p4, %p2095_p2 }
  0xc0   : > { %2103 = shalt.err (!%p2100_p3)
}
  0xc1   : > { %s2104_s25 = scalar_lea.vmem %s336_s9, 16  ;;  %s2111_s21 = scalar_lea.vmem %s336_s9, 32 }
  0xc2   : > { %p2105_p13 = scmp.ne.s32.totalorder %s336_s9, %s2104_s25  ;;  %p2112_p1 = scmp.lt.s32.totalorder %s336_s9, %s336_s9 }
  0xc3   : > { %p2113_p10 = scmp.lt.s32.totalorder %s2111_s21, %s2104_s25 }
  0xc4   : > { %p2107_p0 = pnand %p2105_p13, %p3794_p7 }
  0xc5   : > { %p2114_p12 = por %p2113_p10, %p2112_p1 }
  0xc6   : > { %p2108_p8 = pneg %p2107_p0 }
  0xc8   : > { %p2115_p6 = pnand %p2114_p12, %p2108_p8 }
  0xca   : > { %2118 = shalt.err (!%p2115_p6)
}
  0xcb   : > { %p3795_p5 = scmp.ne.s32.totalorder %s3774_s27, 0  ;;  %s2361_s1 = smov [#allocation13]  }
  0xcc   : > { %s359_s20 = sshll.u32 %s2361_s1, 4  ;;  %s2362_s5 = smov [#allocation16]   ;;  %s360_s20 = int_to_ptr.vmem [resolvable:$true] %s359_s20 }
  0xcd   : > { %1838 = dma.hbm_to_vmem [thread:$0]  (!%p3795_p5), %s3713_s4, 16, %s336_s9, [#allocation9]  }
  0xce   : > { %s383_s13 = sshll.u32 %s2362_s5, 4  ;;  %s2119_s23 = scalar_lea.hbm %s3715_s6, 16  ;;  %s384_s13 = int_to_ptr.vmem [resolvable:$true] %s383_s13 }
  0xcf   : > { %p2120_p6 = scmp.ne.s32.totalorder %s3715_s6, %s2119_s23  ;;  %p2126_p4 = scmp.lt.u32.totalorder %s2119_s23, %s3715_s6 }
  0xd1   : > { %p2122_p11 = pnand %p2120_p6, %p3794_p7 }
  0xd3   : > { %p2123_p2 = pneg %p2122_p11 }
  0xd5   : > { %p2128_p3 = pnand %p2126_p4, %p2123_p2 }
  0xd7   : > { %2131 = shalt.err (!%p2128_p3)
}
  0xd8   : > { %s2132_s9 = scalar_lea.vmem %s360_s20, 16  ;;  %s2139_s7 = scalar_lea.vmem %s360_s20, 32 }
  0xd9   : > { %p2133_p13 = scmp.ne.s32.totalorder %s360_s20, %s2132_s9  ;;  %p2140_p1 = scmp.lt.s32.totalorder %s360_s20, %s360_s20 }
  0xda   : > { %p2141_p10 = scmp.lt.s32.totalorder %s2139_s7, %s2132_s9 }
  0xdb   : > { %p2135_p0 = pnand %p2133_p13, %p3794_p7 }
  0xdc   : > { %p2142_p12 = por %p2141_p10, %p2140_p1 }
  0xdd   : > { %p2136_p8 = pneg %p2135_p0 }
  0xdf   : > { %p2143_p9 = pnand %p2142_p12, %p2136_p8 }
  0xe1   : > { %2146 = shalt.err (!%p2143_p9)
}
  0xe2   : > { %1844 = dma.hbm_to_vmem [thread:$0]  (!%p3795_p5), %s3715_s6, 16, %s360_s20, [#allocation12]  }
  0xe3   : > { %s2147_s30 = scalar_lea.hbm %s3717_s8, 16 }
  0xe4   : > { %p2148_p6 = scmp.ne.s32.totalorder %s3717_s8, %s2147_s30  ;;  %p2154_p9 = scmp.lt.u32.totalorder %s2147_s30, %s3717_s8 }
  0xe6   : > { %p2150_p11 = pnand %p2148_p6, %p3794_p7 }
  0xe8   : > { %p2151_p2 = pneg %p2150_p11 }
  0xea   : > { %p2156_p4 = pnand %p2154_p9, %p2151_p2 }
  0xec   : > { %2159 = shalt.err (!%p2156_p4)
}
  0xed   : > { %s2160_s9 = scalar_lea.vmem %s384_s13, 16  ;;  %s2167_s20 = scalar_lea.vmem %s384_s13, 32 }
  0xee   : > { %p2161_p3 = scmp.ne.s32.totalorder %s384_s13, %s2160_s9  ;;  %p2168_p8 = scmp.lt.s32.totalorder %s384_s13, %s384_s13 }
  0xef   : > { %p2169_p1 = scmp.lt.s32.totalorder %s2167_s20, %s2160_s9 }
  0xf0   : > { %p2163_p13 = pnand %p2161_p3, %p3794_p7 }
  0xf1   : > { %p2170_p10 = por %p2169_p1, %p2168_p8 }
  0xf2   : > { %p2164_p0 = pneg %p2163_p13 }
  0xf4   : > { %p2171_p12 = pnand %p2170_p10, %p2164_p0 }
  0xf6   : > { %2174 = shalt.err (!%p2171_p12)
}
  0xf7   : > { %1850 = dma.hbm_to_vmem [thread:$0]  (!%p3795_p5), %s3717_s8, 16, %s384_s13, [#allocation15]  }
  0xf8   : > { %s2363_s5 = smov [#allocation19]   ;;  %s2175_s17 = scalar_lea.hbm %s3719_s10, 16 }
  0xf9   : > { %s405_s23 = sshll.u32 %s2363_s5, 4  ;;  %p2176_p6 = scmp.ne.s32.totalorder %s3719_s10, %s2175_s17  ;;  %s406_s23 = int_to_ptr.vmem [resolvable:$true] %s405_s23 }
  0xfa   : > { %p2182_p9 = scmp.lt.u32.totalorder %s2175_s17, %s3719_s10 }
  0xfb   : > { %p2178_p11 = pnand %p2176_p6, %p3794_p7 }
  0xfd   : > { %p2179_p2 = pneg %p2178_p11 }
  0xff   : > { %p2184_p4 = pnand %p2182_p9, %p2179_p2 }
 0x101   : > { %2187 = shalt.err (!%p2184_p4)
}
 0x102   : > { %s2188_s13 = scalar_lea.vmem %s406_s23, 16  ;;  %s2195_s20 = scalar_lea.vmem %s406_s23, 32 }
 0x103   : > { %p2189_p3 = scmp.ne.s32.totalorder %s406_s23, %s2188_s13  ;;  %p2196_p8 = scmp.lt.s32.totalorder %s406_s23, %s406_s23 }
 0x104   : > { %p2197_p1 = scmp.lt.s32.totalorder %s2195_s20, %s2188_s13 }
 0x105   : > { %p2191_p13 = pnand %p2189_p3, %p3794_p7 }
 0x106   : > { %p2198_p10 = por %p2197_p1, %p2196_p8 }
 0x107   : > { %p2192_p0 = pneg %p2191_p13 }
 0x109   : > { %p2199_p12 = pnand %p2198_p10, %p2192_p0 }
 0x10b   : > { %2202 = shalt.err (!%p2199_p12)
}
 0x10c   : > { %1856 = dma.hbm_to_vmem [thread:$0]  (!%p3795_p5), %s3719_s10, 16, %s406_s23, [#allocation18]  }
 0x10d   : > { %s2728_s15 = scalar_lea.hbm %s3709_s0, %s2600_s26  ;;  %s420_s30 = scalar_lea.vmem [#allocation2], %s2597_s22 }
 0x10e   : > { %s427_s17 = sshll.u32 %s420_s30, 4  ;;  %s3796_s27 = sand.u32 1, %s2345_s19   ;;  %s2731_s17 = int_to_ptr.vmem [resolvable:$true] %s427_s17 }
 0x10f   : > { %s2735_s25 = scalar_lea.sflag [#allocation3], %s3796_s27  ;;  %s2203_s21 = scalar_lea.hbm %s2728_s15, 1024 }
 0x110   : > { %p2204_p7 = scmp.ne.s32.totalorder %s2728_s15, %s2203_s21  ;;  %p3797_p6 = scmp.ne.s32.totalorder %s3791_s12, 0 }
 0x111   : > { %s2208_s9 = scalar_lea.hbm %s3709_s0, 8192  ;;  %p2209_p2 = scmp.lt.u32.totalorder %s2728_s15, %s3709_s0 }
 0x112   : > { %p2206_p5 = pnand %p2204_p7, %p3797_p6  ;;  %p2210_p9 = scmp.lt.u32.totalorder %s2208_s9, %s2203_s21 }
 0x113   : > { %p2212_p3 = scmp.lt.u32.totalorder %s2203_s21, %s2728_s15 }
 0x114   : > { %p2207_p11 = pneg %p2206_p5  ;;  %p2211_p4 = por %p2210_p9, %p2209_p2 }
 0x116   : > { %p2213_p13 = por %p2212_p3, %p2211_p4 }
 0x118   : > { %p2214_p0 = pnand %p2213_p13, %p2207_p11 }
 0x11a   : > { %2217 = shalt.err (!%p2214_p0)
}
 0x11b   : > { %s2218_s7 = scalar_lea.vmem %s2731_s17, 1024  ;;  %s2364_s1 = smov [#allocation2]  }
 0x11c   : > { %p2219_p8 = scmp.ne.s32.totalorder %s2731_s17, %s2218_s7  ;;  %s2223_s5 = sshll.u32 %s2364_s1, 4  ;;  %s2224_s5 = int_to_ptr.vmem [resolvable:$false] %s2223_s5 }
 0x11d   : > { %s2225_s16 = scalar_lea.vmem %s2224_s5, 2048  ;;  %p2226_p12 = scmp.lt.s32.totalorder %s2731_s17, %s2224_s5 }
 0x11e   : > { %p2221_p1 = pnand %p2219_p8, %p3797_p6  ;;  %p2227_p7 = scmp.lt.s32.totalorder %s2225_s16, %s2218_s7 }
 0x120   : > { %p2222_p10 = pneg %p2221_p1  ;;  %p2228_p5 = por %p2227_p7, %p2226_p12 }
 0x122   : > { %p2229_p2 = pnand %p2228_p5, %p2222_p10 }
 0x124   : > { %2232 = shalt.err (!%p2229_p2)
}
 0x125   : > { %p3798_p11 = scmp.ne.s32.totalorder %s3789_s29, 0  ;;  %s2766_s21 = scalar_lea.hbm %s3711_s2, %s2600_s26 }
 0x126   : > { %s462_s23 = scalar_lea.vmem [#allocation7], %s2597_s22  ;;  %s2233_s9 = scalar_lea.hbm %s2766_s21, 1024 }
 0x127   : > { %1860 = dma.hbm_to_vmem [thread:$0]  (!%p3798_p11), %s2728_s15, 1024, %s2731_s17, %s2735_s25, %s3793_s28, %s3793_s28, %s3792_s11  }
 0x128   : > { %s469_s3 = sshll.u32 %s462_s23, 4  ;;  %p2234_p9 = scmp.ne.s32.totalorder %s2766_s21, %s2233_s9  ;;  %s2769_s3 = int_to_ptr.vmem [resolvable:$true] %s469_s3 }
 0x129   : > { %s2238_s17 = scalar_lea.hbm %s3711_s2, 8192  ;;  %p2239_p13 = scmp.lt.u32.totalorder %s2766_s21, %s3711_s2 }
 0x12a   : > { %p2236_p4 = pnand %p2234_p9, %p3797_p6  ;;  %p2240_p0 = scmp.lt.u32.totalorder %s2238_s17, %s2233_s9 }
 0x12b   : > { %p2242_p1 = scmp.lt.u32.totalorder %s2233_s9, %s2766_s21 }
 0x12c   : > { %p2237_p3 = pneg %p2236_p4  ;;  %p2241_p8 = por %p2240_p0, %p2239_p13 }
 0x12e   : > { %p2243_p10 = por %p2242_p1, %p2241_p8 }
 0x130   : > { %p2244_p12 = pnand %p2243_p10, %p2237_p3 }
 0x132   : > { %2247 = shalt.err (!%p2244_p12)
}
 0x133   : > { %s2248_s22 = scalar_lea.vmem %s2769_s3, 1024  ;;  %s2365_s20 = smov [#allocation7]  }
 0x134   : > { %p2249_p7 = scmp.ne.s32.totalorder %s2769_s3, %s2248_s22  ;;  %s2253_s7 = sshll.u32 %s2365_s20, 4  ;;  %s2254_s7 = int_to_ptr.vmem [resolvable:$false] %s2253_s7 }
 0x135   : > { %s2255_s1 = scalar_lea.vmem %s2254_s7, 2048  ;;  %p2256_p9 = scmp.lt.s32.totalorder %s2769_s3, %s2254_s7 }
 0x136   : > { %p2251_p5 = pnand %p2249_p7, %p3797_p6  ;;  %p2257_p4 = scmp.lt.s32.totalorder %s2255_s1, %s2248_s22 }
 0x138   : > { %p2252_p2 = pneg %p2251_p5  ;;  %p2258_p13 = por %p2257_p4, %p2256_p9 }
 0x13a   : > { %p2259_p0 = pnand %p2258_p13, %p2252_p2 }
 0x13c   : > { %2262 = shalt.err (!%p2259_p0)
}
 0x13d   : > { %1866 = dma.hbm_to_vmem [thread:$0]  (!%p3798_p11), %s2766_s21, 1024, %s2769_s3, %s2618_s14, %s3793_s28, %s3793_s28, %s3792_s11  }
 0x13e   : > { %p3799_p6 = scmp.ne.s32.totalorder %s3773_s24, 0 }
 0x140   : > { %481 = sbr.rel (%p3799_p6) target bundleno = 1131 (0x46b), region = 64 }
 0x147   : > { %s3800_s12 = sld [smem:[#allocation33_spill]]  ;;  %s2799_s5 = sand.u32 1, %s2341_s18  }
 0x148   : > { %s2802_s16 = sshll.u32 %s2799_s5, 6  ;;  %s484_s29 = scalar_lea.sflag [#allocation3], %s2799_s5 }
 0x149   : > { %s2806_s30 = scalar_lea.vmem [#allocation2], %s2802_s16 }
 0x14d   : > { %p3801_p3 = scmp.ne.s32.totalorder %s3800_s12, 0 }
 0x14f   : > { %2308 = dma.done.wait (%p3801_p3), %s484_s29, 1024  }
 0x150   : > { %2310 = vsyncadd (%p3801_p3), %s484_s29, 4294966272  ;;  %s3802_s14 = sld [smem:[#allocation30_spill]]  ;;  %s2814_s28 = scalar_lea.vmem [#allocation5], %s2802_s16 }
 0x156   : > { %s492_s24 = sand.u32 1, %s3802_s14  }
 0x157   : > { %s493_s11 = scalar_lea.sflag [#allocation6], %s492_s24 }
 0x158   : > { %2312 = dma.done.wait (%p3801_p3), %s493_s11, 2048  }
 0x159   : > { %2314 = vsyncadd (%p3801_p3), %s493_s11, 4294965248  ;;  %s2821_s27 = scalar_lea.vmem [#allocation7], %s2802_s16  ;;  %p3803_p11 = scmp.eq.s32.totalorder %s3802_s14, 0 }
 0x15b   : > { %2316 = dma.done.wait (%p3803_p11), [#allocation9], 80   ;;  %p3804_p8 = pmov %p3803_p11 }
 0x15d   : > { %2318 = vsyncadd (%p3804_p8), [#allocation9], 4294967216  ;;  %p3805_p1 = pmov %p3804_p8 }
 0x15f   : > { %2320 = dma.done.wait (%p3805_p1), [#allocation12], 272   ;;  %p3806_p10 = pmov %p3805_p1 }
 0x160   : > { %p3807_p12 = pmov %p3805_p1 }
 0x161   : > { %2322 = vsyncadd (%p3806_p10), [#allocation12], 4294967024 }
 0x162   : > { %2324 = dma.done.wait (%p3807_p12), [#allocation15], 400   ;;  %p3808_p7 = pmov %p3805_p1 }
 0x163   : > { %p3809_p5 = pmov %p3805_p1 }
 0x164   : > { %2326 = vsyncadd (%p3808_p7), [#allocation15], 4294966896 }
 0x165   : > { %2328 = dma.done.wait (%p3809_p5), [#allocation18], 80   ;;  %p3810_p2 = pmov %p3805_p1 }
 0x166   : > { %v2366_v0 = vmov 0   ;;  %vm624_vm0 = vcmask 1043456   ;;  %v603_v1 = vld [vmem:[#allocation8] sm:$0xf]  ;;  %v710_v2 = vld [vmem:[%s2814_s28 + $0x38] sm:$0xff]  ;;  %vm611_vm1 = vcmask 64512  }
 0x167   : > { %2330 = vsyncadd (%p3810_p2), [#allocation18], 4294967216  ;;  %1937 = vset.pattern.permute.xlu1 %v2366_v0  ;;  %1936 = vset.pattern.permute.xlu0 %v2366_v0  ;;  %v703_v3 = vld [vmem:[%s2814_s28] sm:$0xff]  ;;  %v626_v4 = vsel %vm624_vm0, %v603_v1, 0  ;;  %vm726_vm2 = vcmp.eq.s32.totalorder %v710_v2, 0  ;;  %v592_v6 = vld [vmem:[%s2806_s30 + $0x8] sm:$0xff] }
 0x168   : > { %1789 = vmatprep.subr.msk.bf16.mxu0 %vm624_vm0, %v603_v1  ;;  %1790 = vmatprep.subr.msk.bf16.mxu1 %vm624_vm0, %v603_v1  ;;  %vm719_vm3 = vcmp.eq.s32.totalorder %v703_v3, 0  ;;  %v591_v5 = vld [vmem:[%s2806_s30] sm:$0xff]  ;;  %v758_v8 = vsel %vm726_vm2, 1, %v2366_v0  ;;  %v596_v11 = vld [vmem:[%s2806_s30 + $0x28] sm:$0xff]  ;;  %v593_v12 = vld [vmem:[%s2806_s30 + $0x10] sm:$0xff]  ;;  %vm727_vm6 = vcmp.eq.s32.totalorder %v703_v3, 7 }
 0x169   : > { %v595_v7 = vld [vmem:[%s2806_s30 + $0x20] sm:$0xff]  ;;  %1754 = vmatpush3.bf16.msra.mxu0 %v626_v4  ;;  %1788 = vmatpush3.bf16.msra.mxu1 %v626_v4  ;;  %v751_v9 = vsel %vm719_vm3, 1, %v2366_v0  ;;  %v599_v10 = vpack.c.bf16 %v592_v6, %v591_v5  ;;  %v594_v13 = vld [vmem:[%s2806_s30 + $0x18] sm:$0xff]  ;;  %v597_v16 = vld [vmem:[%s2806_s30 + $0x30] sm:$0xff]  ;;  %v799_v24 = vsel %vm727_vm6, 1, %v2366_v0  ;;  %vm734_vm8 = vcmp.eq.s32.totalorder %v710_v2, 7 }
 0x16a   : > { %781 = vperm.xlu1 %1937, %v758_v8   ;;  %760 = vperm.xlu0 %1936, %v751_v9   ;;  %v601_v14 = vpack.c.bf16 %v596_v11, %v595_v7  ;;  %v600_v15 = vpack.c.bf16 %v594_v13, %v593_v12  ;;  %v598_v17 = vld [vmem:[%s2806_s30 + $0x38] sm:$0xff]  ;;  %v705_v18 = vld [vmem:[%s2814_s28 + $0x10] sm:$0xff]  ;;  %v704_v20 = vld [vmem:[%s2814_s28 + $0x8] sm:$0xff]  ;;  %v806_v27 = vsel %vm734_vm8, 1, %v2366_v0  ;;  %v847_v12 = vlaneseq  ;;  %s585_s21 = scalar_lea.vmem [#allocation20], %s2802_s16  ;;  %s1735_s23 = sshll.u32 %s3802_s14, 10 }
 0x16b   : > { %1755 = vmatprep.mubr.msk.bf16.mxu0 %vm611_vm1, %v599_v10  ;;  %v602_v19 = vpack.c.bf16 %v598_v17, %v597_v16  ;;  %vm721_vm4 = vcmp.eq.s32.totalorder %v705_v18, 0  ;;  %v706_v21 = vld [vmem:[%s2814_s28 + $0x18] sm:$0xff]  ;;  %vm720_vm5 = vcmp.eq.s32.totalorder %v704_v20, 0  ;;  %vm728_vm9 = vcmp.eq.s32.totalorder %v704_v20, 7  ;;  %v707_v26 = vld [vmem:[%s2814_s28 + $0x20] sm:$0xff]  ;;  %v709_v31 = vld [vmem:[%s2814_s28 + $0x30] sm:$0xff] }
 0x16c   : > { %1759 = vmatprep.mubr.msk.bf16.mxu1 %vm611_vm1, %v601_v14  ;;  %1756 = vmatmul.mubr.msk.bf16.vlgmr.msra.gmra.mrb[0].mxu0 %vm611_vm1, %v600_v15  ;;  %v753_v22 = vsel %vm721_vm4, 1, %v2366_v0  ;;  %vm722_vm7 = vcmp.eq.s32.totalorder %v706_v21, 0  ;;  %v752_v23 = vsel %vm720_vm5, 1, %v2366_v0  ;;  %v800_v28 = vsel %vm728_vm9, 1, %v2366_v0  ;;  %v708_v32 = vld [vmem:[%s2814_s28 + $0x28] sm:$0xff]  ;;  %v711_v35 = vld [vmem:[%s2821_s27] sm:$0xff] }
 0x16d   : > { %1760 = vmatmul.mubr.msk.bf16.vlgmr.msra.gmra.mrb[0].mxu1 %vm611_vm1, %v602_v19  ;;  %v754_v25 = vsel %vm722_vm7, 1, %v2366_v0  ;;  %vm729_vm10 = vcmp.eq.s32.totalorder %v705_v18, 7  ;;  %vm723_vm11 = vcmp.eq.s32.totalorder %v707_v26, 0  ;;  %vm731_vm12 = vcmp.eq.s32.totalorder %v707_v26, 7  ;;  %v712_v38 = vld [vmem:[%s2821_s27 + $0x8] sm:$0xff]  ;;  %v714_v41 = vld [vmem:[%s2821_s27 + $0x18] sm:$0xff] }
 0x16e   : > { %766 = vperm.xlu1 %1937, %v753_v22   ;;  %763 = vperm.xlu0 %1936, %v752_v23   ;;  %v801_v29 = vsel %vm729_vm10, 1, %v2366_v0  ;;  %v755_v30 = vsel %vm723_vm11, 1, %v2366_v0  ;;  %vm730_vm13 = vcmp.eq.s32.totalorder %v706_v21, 7  ;;  %v803_v33 = vsel %vm731_vm12, 1, %v2366_v0  ;;  %v713_v42 = vld [vmem:[%s2821_s27 + $0x10] sm:$0xff]  ;;  %v716_v49 = vld [vmem:[%s2821_s27 + $0x28] sm:$0xff] }
 0x16f   : > { %v802_v34 = vsel %vm730_vm13, 1, %v2366_v0  ;;  %vm725_vm14 = vcmp.eq.s32.totalorder %v709_v31, 0  ;;  %vm724_vm15 = vcmp.eq.s32.totalorder %v708_v32, 0  ;;  %vm735_vm2 = vcmp.eq.s32.totalorder %v711_v35, 0  ;;  %v715_v50 = vld [vmem:[%s2821_s27 + $0x20] sm:$0xff]  ;;  %v718_v53 = vld [vmem:[%s2821_s27 + $0x38] sm:$0xff] }
 0x170   : > { %v757_v36 = vsel %vm725_vm14, 1, %v2366_v0  ;;  %v756_v37 = vsel %vm724_vm15, 1, %v2366_v0  ;;  %vm732_vm3 = vcmp.eq.s32.totalorder %v708_v32, 7  ;;  %v1002_v39 = vsel %vm735_vm2, 1, %v2366_v0  ;;  %v717_v54 = vld [vmem:[%s2821_s27 + $0x30] sm:$0xff]  ;;  %v1938_v63 = vld [vmem:[#allocation14] sm:$0xff]  }
 0x171   : > { %v804_v40 = vsel %vm732_vm3, 1, %v2366_v0  ;;  %vm733_vm4 = vcmp.eq.s32.totalorder %v709_v31, 7  ;;  %vm736_vm5 = vcmp.eq.s32.totalorder %v712_v38, 0  ;;  %vm738_vm6 = vcmp.eq.s32.totalorder %v714_v41, 0  ;;  %v1939_v1 = vld [vmem:[#allocation14 + $0x8] sm:$0xff]   ;;  %1763 = vmatprep.subr.bf16.mxu1 %v1938_v63  ;;  %v1940_v2 = vld [vmem:[#allocation14 + $0x10] sm:$0xff]  }
 0x172   : > { %808 = vperm.xlu1 %1937, %v799_v24   ;;  %769 = vperm.xlu0 %1936, %v754_v25   ;;  %v805_v43 = vsel %vm733_vm4, 1, %v2366_v0  ;;  %v1003_v44 = vsel %vm736_vm5, 1, %v2366_v0  ;;  %vm737_vm7 = vcmp.eq.s32.totalorder %v713_v42, 0  ;;  %v1005_v45 = vsel %vm738_vm6, 1, %v2366_v0  ;;  %v701_v19 = vld [vmem:[#allocation11] sm:$0xff]  ;;  %s1482_s3 = sshll.u32 %s585_s21, 4  ;;  %s3663_s3 = int_to_ptr.vmem [resolvable:$true] %s1482_s3 }
 0x173   : > { %v1004_v46 = vsel %vm737_vm7, 1, %v2366_v0  ;;  %vm744_vm8 = vcmp.eq.s32.totalorder %v712_v38, 7  ;;  %vm743_vm9 = vcmp.eq.s32.totalorder %v711_v35, 7  ;;  %vm746_vm10 = vcmp.eq.s32.totalorder %v714_v41, 7  ;;  %1764 = vmatpush3.bf16.msra.mxu1 %v1938_v63  ;;  %v2936_v26 = vld [vmem:[#allocation10] ss:$0 sm:$0xff] }
 0x174   : > { %v1160_v47 = vsel %vm744_vm8, 1, %v2366_v0  ;;  %v1159_v48 = vsel %vm743_vm9, 1, %v2366_v0  ;;  %vm745_vm11 = vcmp.eq.s32.totalorder %v713_v42, 7  ;;  %v1162_v51 = vsel %vm746_vm10, 1, %v2366_v0  ;;  %1765 = vmatprep.subr.bf16.mxu1 %v1939_v1  ;;  %s3904_s9 = sld [smem:[#allocation34_spill]]  ;;  %s3905_s17 = sld [smem:[#allocation59_spill]] }
 0x175   : > { %v1161_v52 = vsel %vm745_vm11, 1, %v2366_v0  ;;  %vm740_vm12 = vcmp.eq.s32.totalorder %v716_v49, 0  ;;  %vm739_vm13 = vcmp.eq.s32.totalorder %v715_v50, 0  ;;  %vm742_vm14 = vcmp.eq.s32.totalorder %v718_v53, 0  ;;  %s1469_s22 = scalar_lea.sflag [#allocation4], %s2799_s5  ;;  %s2263_s20 = scalar_lea.vmem %s3663_s3, 1024 }
 0x176   : > { %829 = vperm.xlu1 %1937, %v806_v27   ;;  %811 = vperm.xlu0 %1936, %v800_v28   ;;  %v1007_v55 = vsel %vm740_vm12, 1, %v2366_v0  ;;  %v1006_v56 = vsel %vm739_vm13, 1, %v2366_v0  ;;  %vm741_vm15 = vcmp.eq.s32.totalorder %v717_v54, 0  ;;  %v1009_v57 = vsel %vm742_vm14, 1, %v2366_v0  ;;  %p2264_p9 = scmp.ne.s32.totalorder %s3663_s3, %s2263_s20  ;;  %s2367_s7 = smov [#allocation20]  }
 0x177   : > { %v1008_v58 = vsel %vm741_vm15, 1, %v2366_v0  ;;  %vm748_vm2 = vcmp.eq.s32.totalorder %v716_v49, 7  ;;  %vm747_vm3 = vcmp.eq.s32.totalorder %v715_v50, 7  ;;  %vm750_vm4 = vcmp.eq.s32.totalorder %v718_v53, 7  ;;  %1766 = vmatpush3.bf16.msra.mxu1 %v1939_v1  ;;  %s2267_s1 = sshll.u32 %s2367_s7, 4  ;;  %s2268_s1 = int_to_ptr.vmem [resolvable:$false] %s2267_s1 }
 0x178   : > { %v1164_v59 = vsel %vm748_vm2, 1, %v2366_v0  ;;  %v1163_v60 = vsel %vm747_vm3, 1, %v2366_v0  ;;  %vm749_vm5 = vcmp.eq.s32.totalorder %v717_v54, 7  ;;  %v1166_v61 = vsel %vm750_vm4, 1, %v2366_v0  ;;  %1767 = vmatprep.subr.bf16.mxu1 %v1940_v2  ;;  %s2269_s12 = scalar_lea.vmem %s2268_s1, 2048  ;;  %p2270_p6 = scmp.lt.s32.totalorder %s3663_s3, %s2268_s1 }
 0x179   : > { %v1165_v62 = vsel %vm749_vm5, 1, %v2366_v0  ;;  %v2922_v14 = vshrl.u32 %v847_v12, 7  ;;  %p2271_p3 = scmp.lt.s32.totalorder %s2269_s12, %s2263_s20 }
 0x17a   : > { %814 = vperm.xlu1 %1937, %v801_v29   ;;  %772 = vperm.xlu0 %1936, %v755_v30   ;;  %s3906_s25 = smov %s3905_s17  ;;  %s3661_s26 = scalar_lea.hbm %s3905_s17, %s1735_s23 }
 0x17b   : > { %1768 = vmatpush3.bf16.msra.mxu1 %v1940_v2  ;;  %v849_v17 = vsub.s32 4, %v2922_v14  ;;  %v861_v18 = vsub.s32 1, %v2922_v14  ;;  %v881_v20 = vsub.s32 7, %v2922_v14  ;;  %v920_v21 = vsub.s32 3, %v2922_v14  ;;  %p3907_p4 = scmp.ne.s32.totalorder %s3904_s9, 0  ;;  %p2272_p11 = por %p2271_p3, %p2270_p6 }
 0x17c   : > { %v984_v22 = vsub.s32 6, %v2922_v14  ;;  %v1077_v23 = vsub.s32 5, %v2922_v14  ;;  %v1105_v24 = vsub.s32 2, %v2922_v14  ;;  %v948_v25 = vsub.s32 0, %v2922_v14 }
 0x17d   : > { %v2940_v28 = vrot.slane %v701_v19, %v849_v17  ;;  %v2942_v29 = vrot.slane %v701_v19, %v861_v18  ;;  %v2944_v32 = vrot.slane %v701_v19, %v881_v20  ;;  %vm909_vm2 = vcmp.lt.s32.totalorder %v2922_v14, 1  ;;  %p2265_p13 = pnand %p2264_p9, %p3907_p4 }
 0x17e   : > { %820 = vperm.xlu1 %1937, %v803_v33   ;;  %817 = vperm.xlu0 %1936, %v802_v34   ;;  %v2946_v33 = vrot.slane %v701_v19, %v920_v21  ;;  %v2948_v34 = vrot.slane %v701_v19, %v984_v22  ;;  %v2950_v35 = vrot.slane %v701_v19, %v1077_v23  ;;  %vm1066_vm3 = vcmp.lt.s32.totalorder %v2922_v14, 7 }
 0x17f   : > { %p2266_p0 = pneg %p2265_p13 }
 0x181   : > { %p2273_p8 = pnand %p2272_p11, %p2266_p0 }
 0x182   : > { %778 = vperm.xlu1 %1937, %v757_v36   ;;  %775 = vperm.xlu0 %1936, %v756_v37  }
 0x186   : > { %1011 = vperm.xlu1 %1937, %v1002_v39   ;;  %823 = vperm.xlu0 %1936, %v804_v40   ;;  %v2954_v39 = vrot.slane %v701_v19, %v1105_v24  ;;  %v2956_v40 = vrot.slane %v701_v19, %v948_v25 }
 0x18a   : > { %826 = vperm.xlu1 %1937, %v805_v43   ;;  %1014 = vperm.xlu0 %1936, %v1003_v44  }
 0x18e   : > { %1020 = vperm.xlu1 %1937, %v1005_v45   ;;  %1017 = vperm.xlu0 %1936, %v1004_v46  }
 0x192   : > { %1171 = vperm.xlu1 %1937, %v1160_v47   ;;  %1168 = vperm.xlu0 %1936, %v1159_v48  }
 0x196   : > { %1177 = vperm.xlu1 %1937, %v1162_v51   ;;  %1174 = vperm.xlu0 %1936, %v1161_v52  }
 0x19a   : > { %1026 = vperm.xlu1 %1937, %v1007_v55   ;;  %1023 = vperm.xlu0 %1936, %v1006_v56  }
 0x19e   : > { %1032 = vperm.xlu1 %1937, %v1009_v57   ;;  %1029 = vperm.xlu0 %1936, %v1008_v58  }
 0x1a2   : > { %1183 = vperm.xlu1 %1937, %v1164_v59   ;;  %1180 = vperm.xlu0 %1936, %v1163_v60  }
 0x1a6   : > { %1189 = vperm.xlu1 %1937, %v1166_v61   ;;  %1186 = vperm.xlu0 %1936, %v1165_v62  }
 0x1e9   : > { %v2904_v3 = vpop.permute.xlu0 %760  ;;  %v2906_v4 = vpop.permute.xlu1 %781 }
 0x1ea   : > { %vm790_vm6 = vcmp.eq.s32.totalorder %v2906_v4, 1  ;;  %vm783_vm4 = vcmp.eq.s32.totalorder %v2904_v3, 1 }
 0x1ed   : > { %v2908_v5 = vpop.permute.xlu0 %763  ;;  %v2910_v6 = vpop.permute.xlu1 %766 }
 0x1ee   : > { %vm784_vm7 = vcmp.eq.s32.totalorder %v2908_v5, 1 }
 0x1f1   : > { %v770_v0 = vpop.permute.xlu0 %769  ;;  %v2912_v7 = vpop.permute.xlu1 %808 }
 0x1f2   : > { %vm786_vm8 = vcmp.eq.s32.totalorder %v770_v0, 1 }
 0x1f5   : > { %v812_v8 = vpop.permute.xlu0 %811  ;;  %v2914_v9 = vpop.permute.xlu1 %829 }
 0x1f6   : > { %vm838_vm9 = vcmp.eq.s32.totalorder %v2914_v9, 1  ;;  %vm832_vm10 = vcmp.eq.s32.totalorder %v812_v8, 1 }
 0x1f9   : > { %v2916_v10 = vpop.permute.xlu0 %772  ;;  %v2918_v11 = vpop.permute.xlu1 %814 }
 0x1fa   : > { %vm787_vm14 = vcmp.eq.s32.totalorder %v2916_v10, 1  ;;  %vm833_vm15 = vcmp.eq.s32.totalorder %v2918_v11, 1 }
 0x1fd   : > { %v2920_v13 = vpop.permute.xlu0 %817  ;;  %v2924_v15 = vpop.permute.xlu1 %820 }
 0x1fe   : > { %vm834_vm12 = vcmp.eq.s32.totalorder %v2920_v13, 1 }
 0x201   : > { %v2926_v16 = vpop.permute.xlu0 %775  ;;  %v2938_v27 = vpop.permute.xlu1 %778 }
 0x202   : > { %vm788_vm13 = vcmp.eq.s32.totalorder %v2926_v16, 1 }
 0x205   : > { %v824_v30 = vpop.permute.xlu0 %823  ;;  %v3014_v17 = vpop.permute.xlu1 %1011 }
 0x206   : > { %vm836_vm11 = vcmp.eq.s32.totalorder %v824_v30, 1 }
 0x209   : > { %v827_v21 = vpop.permute.xlu1 %826  ;;  %v3123_v13 = vpop.permute.xlu0 %1014 }
 0x20a   : > { %vm837_vm5 = vcmp.eq.s32.totalorder %v827_v21, 1 }
 0x23f   : > { %v1757_v31 = vpop.f32.mrb[0].mxu0 }
 0x240   : > { %v671_v36 = vadd.f32 %v1757_v31, %v2936_v26  ;;  %v1761_v37 = vpop.f32.mrb[0].mxu1  ;;  %v662_v38 = vpop.f32.mrb[1].mxu0 }
 0x241   : > { %v687_v41 = vadd.f32 %v1761_v37, %v2936_v26  ;;  %v663_v42 = vadd.f32 %v2936_v26, %v662_v38  ;;  %v678_v43 = vpop.f32.mrb[1].mxu1  ;;  %v1758_v44 = vpop.f32.mrb[2].mxu0 }
 0x242   : > { %v2962_v45 = vmax.f32 %v671_v36, 0.0  ;;  %v1762_v46 = vpop.f32.mrb[2].mxu1  ;;  %v665_v47 = vpop.f32.mrb[3].mxu0  ;;  %v679_v50 = vadd.f32 %v2936_v26, %v678_v43  ;;  %v674_v51 = vadd.f32 %v1758_v44, %v2936_v26 }
 0x243   : > { %v2964_v48 = vmax.f32 %v687_v41, 0.0  ;;  %v2966_v49 = vmax.f32 %v663_v42, 0.0  ;;  %v681_v52 = vpop.f32.mrb[3].mxu1  ;;  %v690_v55 = vadd.f32 %v1762_v46, %v2936_v26  ;;  %v666_v56 = vadd.f32 %v2936_v26, %v665_v47 }
 0x244   : > { %v2972_v53 = vsel %vm786_vm8, 0.0, %v2962_v45  ;;  %v2975_v54 = vsel %vm832_vm10, 0.0, %v2962_v45  ;;  %v2983_v57 = vmul.f32 %v2940_v28, %v2962_v45  ;;  %v3755_v60 = vrot.slane %v2962_v45, 7 }
 0x245   : > { %v2987_v58 = vmul.f32 %v2942_v29, %v2972_v53  ;;  %v2991_v59 = vmul.f32 %v2944_v32, %v2975_v54  ;;  %v3753_v61 = vrot.slane %v2972_v53, 7  ;;  %v3754_v62 = vrot.slane %v2975_v54, 7 }
 0x246   : > { %v3000_v1 = vsel %vm790_vm6, 0.0, %v2964_v48  ;;  %v3007_v8 = vsel %vm836_vm11, 0.0, %v2964_v48  ;;  %v3011_v12 = vmul.f32 %v2940_v28, %v2964_v48  ;;  %v3032_v23 = vsel %vm784_vm7, 0.0, %v2966_v49 }
 0x247   : > { %3811 = vst [vmem:[#allocation36_spill] sm:$0xff] %v3007_v8  ;;  %v3018_v4 = vmul.f32 %v2942_v29, %v3000_v1  ;;  %v3022_v18 = vmul.f32 %v2944_v32, %v3007_v8  ;;  %v3037_v24 = vsel %vm838_vm9, 0.0, %v2966_v49  ;;  %v3043_v31 = vmul.f32 %v2940_v28, %v2966_v49 }
 0x248   : > { %v3047_v36 = vmul.f32 %v2942_v29, %v3032_v23  ;;  %v3052_v5 = vmul.f32 %v2944_v32, %v3037_v24  ;;  %v3059_v43 = vmax.f32 %v679_v50, 0.0  ;;  %v696_v44 = vmax.f32 %v674_v51, 0.0 }
 0x249   : > { %3812 = vst [vmem:[#allocation37_spill] sm:$0xff] %v3022_v18  ;;  %v3062_v47 = vmax.f32 %v690_v55, 0.0  ;;  %v3064_v25 = vmax.f32 %v666_v56, 0.0  ;;  %v3067_v30 = vadd.f32 %v2936_v26, %v681_v52  ;;  %vm785_vm6 = vcmp.eq.s32.totalorder %v2910_v6, 1 }
 0x24a   : > { %3813 = vst [vmem:[#allocation38_spill] sm:$0xff] %v3052_v5  ;;  %v3073_v0 = vsel %vm788_vm13, 0.0, %v3059_v43  ;;  %v3078_v50 = vsel %vm834_vm12, 0.0, %v3059_v43  ;;  %v855_v51 = vmul.f32 %v2940_v28, %v3059_v43  ;;  %v3752_v55 = vrot.slane %v3059_v43, 7 }
 0x24b   : > { %v3085_v26 = vmul.f32 %v2942_v29, %v3073_v0  ;;  %v886_v16 = vmul.f32 %v2944_v32, %v3078_v50  ;;  %v3750_v52 = vrot.slane %v3073_v0, 7  ;;  %v3751_v56 = vrot.slane %v3078_v50, 7 }
 0x24c   : > { %v3096_v38 = vsel %vm787_vm14, 0.0, %v696_v44  ;;  %v3100_v41 = vsel %vm833_vm15, 0.0, %v696_v44  ;;  %v854_v22 = vmul.f32 %v2940_v28, %v696_v44  ;;  %v902_v37 = vrot.slane %v696_v44, 7 }
 0x24d   : > { %3814 = vst [vmem:[#allocation39_spill] sm:$0xff] %v3096_v38  ;;  %v867_v20 = vmul.f32 %v2942_v29, %v3096_v38  ;;  %v3107_v9 = vmul.f32 %v2944_v32, %v3100_v41  ;;  %v934_v46 = vrot.slane %v3096_v38, 7  ;;  %v968_v10 = vrot.slane %v3100_v41, 7 }
 0x24e   : > { %v1061_v19 = vrot.slane %v696_v44, 1  ;;  %v874_v42 = vadd.f32 %v2987_v58, %v854_v22  ;;  %v913_v2 = vsel %vm909_vm2, %v902_v37, %v3752_v55  ;;  %v914_v63 = vsel %vm909_vm2, %v3755_v60, %v902_v37 }
 0x24f   : > { %v3112_v11 = vadd.f32 %v867_v20, %v855_v51  ;;  %v3126_v44 = vmul.f32 %v2946_v33, %v914_v63  ;;  %v3129_v58 = vmul.f32 %v2946_v33, %v913_v2  ;;  %v3135_v20 = vsel %vm909_vm2, %v934_v46, %v3750_v52 }
 0x250   : > { %3817 = vst [vmem:[#allocation42_spill] sm:$0xff] %v3135_v20  ;;  %v3141_v22 = vsel %vm909_vm2, %v3753_v61, %v934_v46  ;;  %vm831_vm7 = vcmp.eq.s32.totalorder %v2912_v7, 1  ;;  %v3144_v37 = vadd.f32 %v886_v16, %v874_v42  ;;  %v978_v63 = vsel %vm909_vm2, %v968_v10, %v3751_v56  ;;  %v3169_v61 = vld [vmem:[#allocation11 + $0x8] ss:$0 sm:$0xff] }
 0x251   : > { %3815 = vst [vmem:[#allocation40_spill] sm:$0xff] %v3112_v11  ;;  %3816 = vst [vmem:[#allocation41_spill] sm:$0xff] %v3129_v58  ;;  %v979_v2 = vsel %vm909_vm2, %v3754_v62, %v968_v10  ;;  %v3820_v51 = vrot.slane %v3059_v43, 1  ;;  %v3162_v42 = vmul.f32 %v2948_v34, %v978_v63  ;;  %v3821_v16 = vrot.slane %v2962_v45, 1  ;;  %v3207_v58 = vpop.permute.xlu1 %1020 }
 0x252   : > { %3818 = vst [vmem:[#allocation43_spill] sm:$0xff] %v3141_v22  ;;  %3819 = vst [vmem:[#allocation44_spill] sm:$0xff] %v3144_v37  ;;  %v3159_v52 = vmul.f32 %v2948_v34, %v979_v2  ;;  %v3760_v2 = vrot.slane %v3100_v41, 1  ;;  %v3179_v63 = vsel %vm783_vm4, 0.0, %v3062_v47  ;;  %v3183_v62 = vsel %vm837_vm5, 0.0, %v3062_v47 }
 0x253   : > { %v1070_v46 = vsel %vm1066_vm3, %v1061_v19, %v3820_v51  ;;  %v1071_v56 = vsel %vm1066_vm3, %v3821_v16, %v1061_v19  ;;  %v3759_v51 = vrot.slane %v3096_v38, 1  ;;  %3823 = vst [vmem:[#allocation46_spill] sm:$0xff] %v3183_v62  ;;  %v858_v19 = vmul.f32 %v2940_v28, %v3062_v47  ;;  %v3209_v38 = vpop.permute.xlu0 %1017 }
 0x254   : > { %v1082_v55 = vmul.f32 %v2950_v35, %v1070_v46  ;;  %v3172_v10 = vmul.f32 %v2950_v35, %v1071_v56  ;;  %v863_v56 = vmul.f32 %v2942_v29, %v3179_v63  ;;  %v906_v46 = vrot.slane %v3062_v47, 7 }
 0x255   : > { %v3824_v16 = vrot.slane %v2972_v53, 1  ;;  %v3825_v60 = vrot.slane %v3078_v50, 1  ;;  %v3204_v5 = vmul.f32 %v2944_v32, %v3183_v62  ;;  %v930_v8 = vrot.slane %v3179_v63, 7 }
 0x256   : > { %3822 = vst [vmem:[#allocation45_spill] sm:$0xff] %v3172_v10  ;;  %v3217_v22 = vadd.f32 %v3018_v4, %v858_v19  ;;  %vm789_vm8 = vcmp.eq.s32.totalorder %v2938_v27, 1  ;;  %vm835_vm9 = vcmp.eq.s32.totalorder %v2924_v15, 1  ;;  %v698_v37 = vmax.f32 %v3067_v30, 0.0 }
 0x257   : > { %v1098_v3 = vsel %vm1066_vm3, %v3824_v16, %v3759_v51  ;;  %v1135_v21 = vsel %vm1066_vm3, %v3760_v2, %v3825_v60  ;;  %3826 = vst [vmem:[#allocation47_spill] sm:$0xff] %v3204_v5  ;;  %v871_v51 = vadd.f32 %v863_v56, %v3043_v31  ;;  %v3829_v60 = vrot.slane %v2964_v48, 7 }
 0x258   : > { %v1110_v20 = vmul.f32 %v2954_v39, %v1098_v3  ;;  %v3213_v16 = vmul.f32 %v3169_v61, %v1135_v21  ;;  %3828 = vst [vmem:[#allocation49_spill] sm:$0xff] %v3217_v22  ;;  %v3830_v5 = vrot.slane %v2966_v49, 7  ;;  %v3831_v3 = vrot.slane %v3032_v23, 7  ;;  %v3285_v22 = vpop.permute.xlu0 %1168 }
 0x259   : > { %v910_v2 = vsel %vm909_vm2, %v3829_v60, %v906_v46  ;;  %v3832_v31 = vrot.slane %v3000_v1, 7  ;;  %v1065_v60 = vrot.slane %v3062_v47, 1  ;;  %v3845_v30 = vrot.slane %v2972_v53, 1 }
 0x25a   : > { %3827 = vst [vmem:[#allocation48_spill] sm:$0xff] %v3213_v16  ;;  %v917_v18 = vsel %vm909_vm2, %v906_v46, %v3830_v5  ;;  %v3231_v21 = vsel %vm909_vm2, %v930_v8, %v3831_v3  ;;  %v3240_v19 = vadd.f32 %v1110_v20, %v1082_v55  ;;  %v3246_v5 = vmul.f32 %v2946_v33, %v910_v2 }
 0x25b   : > { %v3237_v4 = vsel %vm909_vm2, %v3832_v31, %v930_v8  ;;  %v3243_v56 = vmul.f32 %v2946_v33, %v917_v18  ;;  %v3256_v55 = vsel %vm785_vm6, 0.0, %v3064_v25  ;;  %v3261_v18 = vsel %vm831_vm7, 0.0, %v3064_v25 }
 0x25c   : > { %3833 = vst [vmem:[#allocation50_spill] sm:$0xff] %v3240_v19  ;;  %3834 = vst [vmem:[#allocation51_spill] sm:$0xff] %v3246_v5  ;;  %v852_v20 = vmul.f32 %v2940_v28, %v3064_v25  ;;  %v865_v47 = vmul.f32 %v2942_v29, %v3256_v55  ;;  %v900_v2 = vrot.slane %v3064_v25, 7  ;;  %v3835_v31 = vrot.slane %v2964_v48, 1  ;;  %v3283_v5 = vpop.permute.xlu1 %1171 }
 0x25d   : > { %v3837_v46 = vrot.slane %v2966_v49, 1  ;;  %v883_v8 = vmul.f32 %v2944_v32, %v3261_v18  ;;  %v932_v3 = vrot.slane %v3256_v55, 7  ;;  %v3841_v19 = vrot.slane %v2972_v53, 7 }
 0x25e   : > { %v3272_v6 = vsel %vm1066_vm3, %v3835_v31, %v1065_v60  ;;  %v872_v62 = vadd.f32 %v3047_v36, %v852_v20  ;;  %v873_v31 = vadd.f32 %v865_v47, %v2983_v57  ;;  %v3842_v57 = vrot.slane %v3032_v23, 7 }
 0x25f   : > { %3836 = vst [vmem:[#allocation52_spill] sm:$0xff] %v3272_v6  ;;  %v3278_v7 = vsel %vm1066_vm3, %v1065_v60, %v3837_v46  ;;  %v3839_v6 = vrot.slane %v2962_v45, 7  ;;  %v3840_v46 = vrot.slane %v2966_v49, 7  ;;  %v942_v36 = vsel %vm909_vm2, %v932_v3, %v3841_v19 }
 0x260   : > { %3838 = vst [vmem:[#allocation53_spill] sm:$0xff] %v3278_v7  ;;  %v943_v20 = vsel %vm909_vm2, %v3842_v57, %v932_v3  ;;  %v3308_v47 = vadd.f32 %v3107_v9, %v873_v31  ;;  %v3318_v57 = vadd.f32 %v883_v8, %v871_v51  ;;  %v3321_v9 = vadd.f32 %v2991_v59, %v872_v62  ;;  %v3339_v59 = vpop.permute.xlu1 %1177 }
 0x261   : > { %v915_v16 = vsel %vm909_vm2, %v900_v2, %v3839_v6  ;;  %v916_v60 = vsel %vm909_vm2, %v3840_v46, %v900_v2  ;;  %v952_v6 = vmul.f32 %v2956_v40, %v943_v20  ;;  %v953_v2 = vmul.f32 %v2956_v40, %v942_v36 }
 0x262   : > { %v923_v7 = vmul.f32 %v2946_v33, %v916_v60  ;;  %v924_v11 = vmul.f32 %v2946_v33, %v915_v16  ;;  %v966_v46 = vrot.slane %v3261_v18, 7  ;;  %v1059_v16 = vrot.slane %v3064_v25, 1 }
 0x263   : > { %v1089_v60 = vrot.slane %v3256_v55, 1  ;;  %v961_v3 = vadd.f32 %v953_v2, %v3126_v44  ;;  %v3843_v31 = vrot.slane %v2962_v45, 1  ;;  %v3844_v25 = vrot.slane %v2966_v49, 1  ;;  %v3341_v45 = vpop.permute.xlu0 %1174 }
 0x264   : > { %v960_v10 = vadd.f32 %v952_v6, %v924_v11  ;;  %v3337_v44 = vsel %vm789_vm8, 0.0, %v698_v37  ;;  %v3348_v49 = vsel %vm835_vm9, 0.0, %v698_v37  ;;  %v856_v53 = vmul.f32 %v2940_v28, %v698_v37 }
 0x265   : > { %v1072_v36 = vsel %vm1066_vm3, %v1059_v16, %v3843_v31  ;;  %v1073_v55 = vsel %vm1066_vm3, %v3844_v25, %v1059_v16  ;;  %v1099_v11 = vsel %vm1066_vm3, %v1089_v60, %v3845_v30  ;;  %v869_v51 = vmul.f32 %v2942_v29, %v3337_v44 }
 0x266   : > { %v3344_v62 = vmul.f32 %v2954_v39, %v1099_v11  ;;  %v3355_v27 = vmul.f32 %v2944_v32, %v3348_v49  ;;  %v904_v8 = vrot.slane %v698_v37, 7  ;;  %v936_v20 = vrot.slane %v3337_v44, 7 }
 0x267   : > { %vm1034_vm10 = vcmp.eq.s32.totalorder %v3014_v17, 1  ;;  %vm1035_vm11 = vcmp.eq.s32.totalorder %v3123_v13, 1  ;;  %v3362_v15 = vadd.f32 %v3085_v26, %v856_v53  ;;  %v3365_v28 = vadd.f32 %v869_v51, %v3011_v12 }
 0x268   : > { %v1063_v29 = vrot.slane %v698_v37, 1  ;;  %vm1036_vm12 = vcmp.eq.s32.totalorder %v3209_v38, 1  ;;  %v3846_v32 = vrot.slane %v2964_v48, 7  ;;  %v3847_v31 = vrot.slane %v3059_v43, 7 }
 0x269   : > { %v3848_v26 = vrot.slane %v3000_v1, 7  ;;  %v3849_v37 = vrot.slane %v3073_v0, 7  ;;  %vm1037_vm13 = vcmp.eq.s32.totalorder %v3207_v58, 1  ;;  %v3850_v51 = vrot.slane %v2964_v48, 1 }
 0x26a   : > { %v911_v16 = vsel %vm909_vm2, %v904_v8, %v3846_v32  ;;  %v912_v25 = vsel %vm909_vm2, %v3847_v31, %v904_v8  ;;  %v3851_v32 = vrot.slane %v3059_v43, 1  ;;  %v3763_v31 = vrot.slane %v3348_v49, 1  ;;  %v3418_v43 = vpop.permute.xlu1 %1026 }
 0x26b   : > { %v3381_v12 = vsel %vm909_vm2, %v936_v20, %v3848_v26  ;;  %v3387_v30 = vsel %vm909_vm2, %v3849_v37, %v936_v20  ;;  %v3391_v11 = vmul.f32 %v2946_v33, %v912_v25  ;;  %v3394_v53 = vmul.f32 %v2946_v33, %v911_v16  ;;  %v3420_v26 = vpop.permute.xlu0 %1023 }
 0x26c   : > { %v3400_v8 = vsel %vm1066_vm3, %v1063_v29, %v3850_v51  ;;  %v3406_v20 = vsel %vm1066_vm3, %v3851_v32, %v1063_v29  ;;  %v950_v25 = vmul.f32 %v2956_v40, %v3237_v4  ;;  %v951_v33 = vmul.f32 %v2956_v40, %v3231_v21 }
 0x26d   : > { %v3852_v48 = vrot.slane %v2975_v54, 7  ;;  %vm1192_vm14 = vcmp.eq.s32.totalorder %v3283_v5, 1  ;;  %v3853_v29 = vrot.slane %v3037_v24, 7  ;;  %v1079_v21 = vmul.f32 %v2950_v35, %v1073_v55 }
 0x26e   : > { %v1080_v51 = vmul.f32 %v2950_v35, %v1072_v36  ;;  %vm1191_vm15 = vcmp.eq.s32.totalorder %v3285_v22, 1  ;;  %vm1194_vm4 = vcmp.eq.s32.totalorder %v3339_v59, 1  ;;  %v3854_v32 = vrot.slane %v3078_v50, 1 }
 0x26f   : > { %v980_v16 = vsel %vm909_vm2, %v966_v46, %v3852_v48  ;;  %v981_v37 = vsel %vm909_vm2, %v3853_v29, %v966_v46  ;;  %v958_v2 = vadd.f32 %v950_v25, %v3243_v56  ;;  %v959_v46 = vadd.f32 %v951_v33, %v923_v7 }
 0x270   : > { %v987_v4 = vmul.f32 %v2948_v34, %v980_v16  ;;  %v1134_v48 = vsel %vm1066_vm3, %v3854_v32, %v3763_v31  ;;  %v986_v16 = vmul.f32 %v2948_v34, %v981_v37  ;;  %vm1193_vm5 = vcmp.eq.s32.totalorder %v3341_v45, 1 }
 0x271   : > { %v1146_v36 = vmul.f32 %v3169_v61, %v1134_v48  ;;  %v3855_v55 = vrot.slane %v3032_v23, 1  ;;  %v3857_v19 = vrot.slane %v3179_v63, 1  ;;  %v3858_v56 = vrot.slane %v3100_v41, 1 }
 0x272   : > { %v3859_v7 = vrot.slane %v2975_v54, 1  ;;  %v994_v33 = vadd.f32 %v986_v16, %v958_v2  ;;  %v995_v37 = vadd.f32 %v987_v4, %v959_v46  ;;  %v997_v31 = vadd.f32 %v3162_v42, %v961_v3  ;;  %v3472_v54 = vpop.permute.xlu1 %1032  ;;  %v3862_v3 = vld [vmem:[#allocation45_spill] sm:$0xff] }
 0x273   : > { %v1100_v29 = vsel %vm1066_vm3, %v3855_v55, %v1089_v60  ;;  %v3856_v6 = vmov %v3855_v55  ;;  %v3861_v55 = vrot.slane %v3261_v18, 1  ;;  %vm1039_vm6 = vcmp.eq.s32.totalorder %v3418_v43, 1 }
 0x274   : > { %v1101_v32 = vsel %vm1066_vm3, %v3857_v19, %v3856_v6  ;;  %v1136_v25 = vsel %vm1066_vm3, %v3859_v7, %v3858_v56  ;;  %v1108_v60 = vmul.f32 %v2954_v39, %v1100_v29  ;;  %v3860_v23 = vmov %v3859_v7  ;;  %v3474_v29 = vpop.permute.xlu0 %1029  ;;  %v3864_v7 = vld [vmem:[#allocation50_spill] sm:$0xff] }
 0x275   : > { %v1107_v48 = vmul.f32 %v2954_v39, %v1101_v32  ;;  %v1137_v19 = vsel %vm1066_vm3, %v3861_v55, %v3860_v23  ;;  %v1144_v41 = vmul.f32 %v3169_v61, %v1136_v25  ;;  %v996_v6 = vadd.f32 %v3159_v52, %v960_v10 }
 0x276   : > { %v1042_v2 = vsel %vm1034_vm10, 0.0, %v994_v33  ;;  %v1043_v4 = vsel %vm1035_vm11, 0.0, %v995_v37  ;;  %v1116_v16 = vadd.f32 %v1108_v60, %v1080_v51  ;;  %v1143_v52 = vmul.f32 %v3169_v61, %v1137_v19  ;;  %v3865_v33 = vld [vmem:[#allocation40_spill] sm:$0xff]  ;;  %v3867_v37 = vld [vmem:[#allocation37_spill] sm:$0xff]  ;;  %v3868_v60 = vld [vmem:[#allocation43_spill] sm:$0xff] }
 0x277   : > { %v1115_v46 = vadd.f32 %v1107_v48, %v1079_v21  ;;  %v1050_v32 = vadd.f32 %v1042_v2, %v3318_v57  ;;  %v1051_v56 = vadd.f32 %v1043_v4, %v3321_v9  ;;  %v1044_v42 = vsel %vm1036_vm12, 0.0, %v996_v6  ;;  %v3863_v57 = vld [vmem:[#allocation44_spill] sm:$0xff]  ;;  %v3869_v19 = vld [vmem:[#allocation42_spill] sm:$0xff]  ;;  %v3870_v4 = vld [vmem:[#allocation41_spill] sm:$0xff] }
 0x278   : > { %v1152_v17 = vadd.f32 %v1144_v41, %v1116_v16  ;;  %v1045_v13 = vsel %vm1037_vm13, 0.0, %v997_v31  ;;  %v1052_v10 = vadd.f32 %v1044_v42, %v3308_v47  ;;  %v1117_v21 = vadd.f32 %v3344_v62, %v3862_v3  ;;  %v3494_v47 = vld [vmem:[#allocation13] ss:$0 sm:$0xff]  ;;  %v3866_v31 = vld [vmem:[#allocation48_spill] sm:$0xff]  ;;  %v1181_v16 = vpop.permute.xlu0 %1180 }
 0x279   : > { %v1151_v51 = vadd.f32 %v1143_v52, %v1115_v46  ;;  %vm1273_vm7 = vcmask 392192   ;;  %v1053_v9 = vadd.f32 %v1045_v13, %v3863_v57  ;;  %v1154_v25 = vadd.f32 %v1146_v36, %v3864_v7  ;;  %v1184_v46 = vpop.permute.xlu1 %1183  ;;  %v3871_v42 = vld [vmem:[#allocation36_spill] sm:$0xff] }
 0x27a   : > { %v895_v38 = vadd.f32 %v3355_v27, %v3865_v33  ;;  %vm1038_vm8 = vcmp.eq.s32.totalorder %v3420_v26, 1  ;;  %v1200_v58 = vsel %vm1192_vm14, 0.0, %v1152_v17  ;;  %v1153_v62 = vadd.f32 %v3866_v31, %v1117_v21 }
 0x27b   : > { %v896_v48 = vadd.f32 %v3867_v37, %v3362_v15  ;;  %v954_v23 = vmul.f32 %v2956_v40, %v3868_v60  ;;  %v1199_v36 = vsel %vm1191_vm15, 0.0, %v1151_v51  ;;  %v1208_v55 = vadd.f32 %v1200_v58, %v1051_v56 }
 0x27c   : > { %v1202_v27 = vsel %vm1194_vm4, 0.0, %v1154_v25  ;;  %v955_v5 = vmul.f32 %v2956_v40, %v3869_v19  ;;  %v1207_v41 = vadd.f32 %v1199_v36, %v1050_v32  ;;  %v1201_v6 = vsel %vm1193_vm5, 0.0, %v1153_v62 }
 0x27d   : > { %v1210_v2 = vadd.f32 %v1202_v27, %v1053_v9  ;;  %v962_v15 = vadd.f32 %v954_v23, %v3870_v4  ;;  %v1223_v52 = vadd.f32 %v3494_v47, %v1208_v55  ;;  %v1209_v22 = vadd.f32 %v1201_v6, %v1052_v10  ;;  %v3881_v4 = vld [vmem:[#allocation46_spill] sm:$0xff] }
 0x27e   : > { %v963_v56 = vadd.f32 %v955_v5, %v3391_v11  ;;  %v3872_v59 = vrot.slane %v3871_v42, 7  ;;  %v3873_v17 = vrot.slane %v3348_v49, 7  ;;  %v1222_v45 = vadd.f32 %v3494_v47, %v1207_v41 }
 0x27f   : > { %v1225_v13 = vadd.f32 %v3494_v47, %v1210_v2  ;;  %v3875_v21 = vrot.slane %v3078_v50, 7  ;;  %v1231_v51 = vmax.f32 %v1223_v52, 0.0  ;;  %v1224_v57 = vadd.f32 %v3494_v47, %v1209_v22 }
 0x280   : > { %v976_v32 = vsel %vm909_vm2, %v3873_v17, %v3872_v59  ;;  %v3874_v3 = vmov %v3873_v17  ;;  %v1083_v7 = vmul.f32 %v2950_v35, %v3406_v20  ;;  %vm1196_vm9 = vcmp.eq.s32.totalorder %v1184_v46, 1  ;;  %v3879_v20 = vld [vmem:[#allocation39_spill] sm:$0xff] }
 0x281   : > { %v977_v10 = vsel %vm909_vm2, %v3875_v21, %v3874_v3  ;;  %v991_v11 = vmul.f32 %v2948_v34, %v976_v32  ;;  %vm1195_vm10 = vcmp.eq.s32.totalorder %v1181_v16, 1  ;;  %v1230_v25 = vmax.f32 %v1222_v45, 0.0  ;;  %v3887_v21 = vld [vmem:[#allocation49_spill] sm:$0xff] }
 0x282   : > { %v990_v9 = vmul.f32 %v2948_v34, %v977_v10  ;;  %v1233_v33 = vmax.f32 %v1225_v13, 0.0  ;;  %v1084_v50 = vmul.f32 %v2950_v35, %v3400_v8  ;;  %v1232_v31 = vmax.f32 %v1224_v57, 0.0  ;;  %v3886_v13 = vld [vmem:[#allocation47_spill] sm:$0xff] }
 0x283   : > { %v999_v58 = vadd.f32 %v991_v11, %v963_v56  ;;  %v3876_v37 = vrot.slane %v3337_v44, 1  ;;  %v3877_v60 = vrot.slane %v3073_v0, 1  ;;  %v3880_v55 = vrot.slane %v3879_v20, 1 }
 0x284   : > { %v998_v62 = vadd.f32 %v990_v9, %v962_v15  ;;  %v1238_v19 = vpack.c.bf16 %v1231_v51, %v1230_v25  ;;  %vm1041_vm11 = vcmp.eq.s32.totalorder %v3472_v54, 1  ;;  %vm1040_vm12 = vcmp.eq.s32.totalorder %v3474_v29, 1 }
 0x285   : > { %v1096_v23 = vsel %vm1066_vm3, %v3877_v60, %v3876_v37  ;;  %v3878_v36 = vmov %v3877_v60  ;;  %v1047_v8 = vsel %vm1039_vm6, 0.0, %v999_v58  ;;  %v1239_v6 = vpack.c.bf16 %v1233_v33, %v1232_v31  ;;  %v3895_v60 = vld [vmem:[#allocation53_spill] sm:$0xff] }
 0x286   : > { %v1097_v27 = vsel %vm1066_vm3, %v3880_v55, %v3878_v36  ;;  %v1112_v41 = vmul.f32 %v2954_v39, %v1096_v23  ;;  %v1046_v0 = vsel %vm1038_vm8, 0.0, %v998_v62  ;;  %v1055_v2 = vadd.f32 %v1047_v8, %v896_v48  ;;  %1769 = vmatprep.mubr.msk.bf16.mxu1 %vm1273_vm7, %v1238_v19  ;;  %v3894_v62 = vld [vmem:[#allocation52_spill] sm:$0xff] }
 0x287   : > { %v1111_v5 = vmul.f32 %v2954_v39, %v1097_v27  ;;  %v3882_v15 = vrot.slane %v3881_v4, 1  ;;  %v3883_v52 = vrot.slane %v3871_v42, 1  ;;  %v1054_v22 = vadd.f32 %v1046_v0, %v895_v38  ;;  %1770 = vmatmul.mubr.msk.bf16.vlgmr.msra.gmra.mrb[4].mxu1 %vm1273_vm7, %v1239_v6  ;;  %v3888_v38 = vld [vmem:[#allocation38_spill] sm:$0xff] }
 0x288   : > { %v1120_v59 = vadd.f32 %v1112_v41, %v1084_v50  ;;  %v3885_v32 = vrot.slane %v3348_v49, 1  ;;  %v897_v3 = vadd.f32 %v3886_v13, %v3365_v28  ;;  %v898_v10 = vadd.f32 %v3888_v38, %v3887_v21  ;;  %v3893_v50 = vld [vmem:[#allocation51_spill] sm:$0xff] }
 0x289   : > { %v1132_v43 = vsel %vm1066_vm3, %v3883_v52, %v3882_v15  ;;  %v1119_v56 = vadd.f32 %v1111_v5, %v1083_v7  ;;  %v3884_v17 = vmov %v3883_v52  ;;  %v956_v11 = vmul.f32 %v2956_v40, %v3387_v30 }
 0x28a   : > { %v1133_v26 = vsel %vm1066_vm3, %v3885_v32, %v3884_v17  ;;  %v1148_v45 = vmul.f32 %v3169_v61, %v1132_v43  ;;  %v957_v49 = vmul.f32 %v2956_v40, %v3381_v12  ;;  %v3889_v51 = vrot.slane %v3037_v24, 7  ;;  %v1187_v17 = vpop.permute.xlu0 %1186 }
 0x28b   : > { %v1147_v48 = vmul.f32 %v3169_v61, %v1133_v26  ;;  %v3890_v57 = vrot.slane %v3881_v4, 7  ;;  %v3892_v28 = vrot.slane %v3871_v42, 7  ;;  %v964_v12 = vadd.f32 %v956_v11, %v3394_v53 }
 0x28c   : > { %v1156_v58 = vadd.f32 %v1148_v45, %v1120_v59  ;;  %v965_v31 = vadd.f32 %v957_v49, %v3893_v50  ;;  %v1085_v37 = vmul.f32 %v2950_v35, %v3894_v62  ;;  %v1086_v23 = vmul.f32 %v2950_v35, %v3895_v60 }
 0x28d   : > { %v974_v9 = vsel %vm909_vm2, %v3890_v57, %v3889_v51  ;;  %v3891_v7 = vmov %v3890_v57  ;;  %v1155_v33 = vadd.f32 %v1147_v48, %v1119_v56  ;;  %v3896_v20 = vrot.slane %v3000_v1, 1 }
 0x28e   : > { %v975_v25 = vsel %vm909_vm2, %v3892_v28, %v3891_v7  ;;  %v993_v40 = vmul.f32 %v2948_v34, %v974_v9  ;;  %v1204_v36 = vsel %vm1196_vm9, 0.0, %v1156_v58  ;;  %v3897_v55 = vrot.slane %v3337_v44, 1  ;;  %v1714_v9 = vld [vmem:[#allocation16] ss:$0 sm:$0xff] }
 0x28f   : > { %v992_v30 = vmul.f32 %v2948_v34, %v975_v25  ;;  %v1203_v42 = vsel %vm1195_vm10, 0.0, %v1155_v33  ;;  %v3898_v53 = vrot.slane %v3179_v63, 1  ;;  %v3899_v27 = vmov %v3896_v20 }
 0x290   : > { %v1095_v34 = vsel %vm1066_vm3, %v3897_v55, %v3896_v20  ;;  %v1211_v8 = vadd.f32 %v1203_v42, %v1054_v22  ;;  %v1212_v35 = vadd.f32 %v1204_v36, %v1055_v2  ;;  %v1001_v5 = vadd.f32 %v993_v40, %v965_v31  ;;  %v1942_v31 = vld [vmem:[%s2806_s30 + $0x18] sm:$0xff] }
 0x291   : > { %v1102_v19 = vsel %vm1066_vm3, %v3899_v27, %v3898_v53  ;;  %v1000_v16 = vadd.f32 %v992_v30, %v964_v12  ;;  %v1113_v46 = vmul.f32 %v2954_v39, %v1095_v34  ;;  %v3900_v44 = vrot.slane %v3037_v24, 1  ;;  %v1941_v12 = vld [vmem:[%s2806_s30 + $0x10] sm:$0xff] }
 0x292   : > { %v1114_v41 = vmul.f32 %v2954_v39, %v1102_v19  ;;  %v3901_v6 = vmov %v3882_v15  ;;  %v3902_v1 = vrot.slane %v3261_v18, 1  ;;  %v1226_v15 = vadd.f32 %v3494_v47, %v1211_v8  ;;  %v1190_v18 = vpop.permute.xlu1 %1189 }
 0x293   : > { %v1131_v63 = vsel %vm1066_vm3, %v3901_v6, %v3900_v44  ;;  %v3903_v0 = vmov %v3900_v44  ;;  %v1227_v52 = vadd.f32 %v3494_v47, %v1212_v35  ;;  %v1048_v39 = vsel %vm1040_vm12, 0.0, %v1000_v16  ;;  %v1947_v6 = vld [vmem:[%s2806_s30 + $0x20] sm:$0xff] }
 0x294   : > { %v1138_v2 = vsel %vm1066_vm3, %v3903_v0, %v3902_v1  ;;  %v1049_v4 = vsel %vm1041_vm11, 0.0, %v1001_v5  ;;  %v1056_v43 = vadd.f32 %v1048_v39, %v897_v3  ;;  %v1121_v56 = vadd.f32 %v1113_v46, %v1085_v37  ;;  %v1943_v37 = vld [vmem:[%s2806_s30] sm:$0xff]  ;;  %v1945_v5 = vld [vmem:[%s2806_s30 + $0x30] sm:$0xff]  ;;  %v1948_v1 = vld [vmem:[%s2806_s30 + $0x28] sm:$0xff] }
 0x295   : > { %v1057_v22 = vadd.f32 %v1049_v4, %v898_v10  ;;  %v1122_v59 = vadd.f32 %v1114_v41, %v1086_v23  ;;  %v1234_v24 = vmax.f32 %v1226_v15, 0.0  ;;  %v1235_v32 = vmax.f32 %v1227_v52, 0.0  ;;  %v1944_v23 = vld [vmem:[%s2806_s30 + $0x8] sm:$0xff]  ;;  %v1946_v41 = vld [vmem:[%s2806_s30 + $0x38] sm:$0xff]  ;;  %v1722_v52 = vld [vmem:[#allocation19] ss:$0 sm:$0xff] }
 0x296   : > { %v1149_v14 = vmul.f32 %v3169_v61, %v1131_v63  ;;  %v1150_v26 = vmul.f32 %v3169_v61, %v1138_v2  ;;  %vm1198_vm2 = vcmp.eq.s32.totalorder %v1190_v18, 1  ;;  %vm1197_vm3 = vcmp.eq.s32.totalorder %v1187_v17, 1  ;;  %v1363_v61 = vld [vmem:[#allocation17] sm:$0xf] }
 0x297   : > { %v1240_v48 = vpack.c.bf16 %v1235_v32, %v1234_v24  ;;  %1791 = vmatprep.subr.msk.bf16.mxu0 %vm624_vm0, %v1363_v61  ;;  %v1384_v57 = vsel %vm624_vm0, %v1363_v61, 0  ;;  %vm1459_vm0 = vcmask 130048  }
 0x298   : > { %v1157_v45 = vadd.f32 %v1149_v14, %v1121_v56  ;;  %v1158_v13 = vadd.f32 %v1150_v26, %v1122_v59  ;;  %1778 = vmatpush3.bf16.msra.mxu0 %v1384_v57 }
 0x299   : > { %1773 = vmatprep.mubr.msk.bf16.mxu1 %vm1273_vm7, %v1240_v48 }
 0x29a   : > { %v1205_v54 = vsel %vm1197_vm3, 0.0, %v1157_v45  ;;  %v1206_v29 = vsel %vm1198_vm2, 0.0, %v1158_v13 }
 0x29b   : > { %v1213_v3 = vadd.f32 %v1205_v54, %v1056_v43  ;;  %v1214_v21 = vadd.f32 %v1206_v29, %v1057_v22 }
 0x29d   : > { %v1228_v38 = vadd.f32 %v3494_v47, %v1213_v3  ;;  %v1229_v10 = vadd.f32 %v3494_v47, %v1214_v21 }
 0x29f   : > { %v1236_v11 = vmax.f32 %v1228_v38, 0.0  ;;  %v1237_v49 = vmax.f32 %v1229_v10, 0.0 }
 0x2a1   : > { %v1241_v51 = vpack.c.bf16 %v1237_v49, %v1236_v11 }
 0x2a3   : > { %1774 = vmatmul.mubr.msk.bf16.gmra.mrb[8].mxu1 %vm1273_vm7, %v1241_v51 }
 0x35a   : > { %v1771_v7 = vpop.f32.mrb[4].mxu1 }
 0x35b   : > { %v1329_v28 = vadd.f32 %v1771_v7, %v1714_v9  ;;  %v1320_v25 = vpop.f32.mrb[5].mxu1 }
 0x35c   : > { %v1321_v47 = vadd.f32 %v1714_v9, %v1320_v25  ;;  %v1772_v33 = vpop.f32.mrb[6].mxu1 }
 0x35d   : > { %v1332_v58 = vadd.f32 %v1772_v33, %v1714_v9  ;;  %v1323_v30 = vpop.f32.mrb[7].mxu1  ;;  %v1353_v50 = vadd.f32 %v1941_v12, %v1329_v28 }
 0x35e   : > { %v1324_v40 = vadd.f32 %v1714_v9, %v1323_v30  ;;  %v1351_v60 = vadd.f32 %v1943_v37, %v1321_v47 }
 0x35f   : > { %v1354_v62 = vadd.f32 %v1942_v31, %v1332_v58 }
 0x360   : > { %v1352_v42 = vadd.f32 %v1944_v23, %v1324_v40 }
 0x361   : > { %v1360_v36 = vpack.c.bf16 %v1354_v62, %v1353_v50 }
 0x362   : > { %v1359_v20 = vpack.c.bf16 %v1352_v42, %v1351_v60 }
 0x364   : > { %1779 = vmatprep.mubr.msk.bf16.mxu0 %vm611_vm1, %v1359_v20 }
 0x365   : > { %1780 = vmatmul.mubr.msk.bf16.vlgmr.msra.gmra.mrb[4].mxu0 %vm611_vm1, %v1360_v36 }
 0x376   : > { %v1775_v55 = vpop.f32.mrb[8].mxu1 }
 0x377   : > { %v1345_v34 = vadd.f32 %v1775_v55, %v1714_v9  ;;  %v1336_v53 = vpop.f32.mrb[9].mxu1 }
 0x378   : > { %v1337_v27 = vadd.f32 %v1714_v9, %v1336_v53  ;;  %v1776_v19 = vpop.f32.mrb[10].mxu1 }
 0x379   : > { %v1348_v8 = vadd.f32 %v1776_v19, %v1714_v9  ;;  %v1339_v35 = vpop.f32.mrb[11].mxu1  ;;  %v1357_v46 = vadd.f32 %v1945_v5, %v1345_v34 }
 0x37a   : > { %v1340_v16 = vadd.f32 %v1714_v9, %v1339_v35  ;;  %v1355_v63 = vadd.f32 %v1947_v6, %v1337_v27 }
 0x37b   : > { %v1358_v44 = vadd.f32 %v1946_v41, %v1348_v8 }
 0x37c   : > { %v1356_v0 = vadd.f32 %v1948_v1, %v1340_v16 }
 0x37d   : > { %v1362_v2 = vpack.c.bf16 %v1358_v44, %v1357_v46 }
 0x37e   : > { %v1361_v15 = vpack.c.bf16 %v1356_v0, %v1355_v63 }
 0x380   : > { %1783 = vmatprep.mubr.msk.bf16.mxu0 %vm611_vm1, %v1361_v15 }
 0x381   : > { %1784 = vmatmul.mubr.msk.bf16.gmra.mrb[8].mxu0 %vm611_vm1, %v1362_v2 }
 0x438   : > { %v1781_v39 = vpop.f32.mrb[4].mxu0 }
 0x439   : > { %v1429_v4 = vadd.f32 %v1781_v39, %v1722_v52  ;;  %v1420_v43 = vpop.f32.mrb[5].mxu0 }
 0x43a   : > { %v1421_v22 = vadd.f32 %v1722_v52, %v1420_v43  ;;  %v1782_v56 = vpop.f32.mrb[6].mxu0 }
 0x43b   : > { %v1453_v59 = vmax.f32 %v1429_v4, 0.0  ;;  %v1432_v18 = vadd.f32 %v1782_v56, %v1722_v52  ;;  %v1423_v17 = vpop.f32.mrb[7].mxu0 }
 0x43c   : > { %v1451_v24 = vmax.f32 %v1421_v22, 0.0  ;;  %v1424_v32 = vadd.f32 %v1722_v52, %v1423_v17 }
 0x43d   : > { %1462 = vst.msk [vmem:[%s585_s21 + $0x10] sm:$0xff] %vm1459_vm0, %v1453_v59  ;;  %v1454_v14 = vmax.f32 %v1432_v18, 0.0 }
 0x43e   : > { %1460 = vst.msk [vmem:[%s585_s21] sm:$0xff] %vm1459_vm0, %v1451_v24  ;;  %v1452_v26 = vmax.f32 %v1424_v32, 0.0 }
 0x43f   : > { %1463 = vst.msk [vmem:[%s585_s21 + $0x18] sm:$0xff] %vm1459_vm0, %v1454_v14 }
 0x440   : > { %1461 = vst.msk [vmem:[%s585_s21 + $0x8] sm:$0xff] %vm1459_vm0, %v1452_v26 }
 0x454   : > { %v1785_v48 = vpop.f32.mrb[8].mxu0 }
 0x455   : > { %v1445_v45 = vadd.f32 %v1785_v48, %v1722_v52  ;;  %v1436_v13 = vpop.f32.mrb[9].mxu0 }
 0x456   : > { %v1437_v54 = vadd.f32 %v1722_v52, %v1436_v13  ;;  %v1786_v29 = vpop.f32.mrb[10].mxu0 }
 0x457   : > { %v1457_v3 = vmax.f32 %v1445_v45, 0.0  ;;  %v1448_v21 = vadd.f32 %v1786_v29, %v1722_v52  ;;  %v1439_v38 = vpop.f32.mrb[11].mxu0 }
 0x458   : > { %v1455_v10 = vmax.f32 %v1437_v54, 0.0  ;;  %v1440_v11 = vadd.f32 %v1722_v52, %v1439_v38 }
 0x459   : > { %1466 = vst.msk [vmem:[%s585_s21 + $0x30] sm:$0xff] %vm1459_vm0, %v1457_v3  ;;  %v1458_v49 = vmax.f32 %v1448_v21, 0.0 }
 0x45a   : > { %1464 = vst.msk [vmem:[%s585_s21 + $0x20] sm:$0xff] %vm1459_vm0, %v1455_v10  ;;  %v1456_v51 = vmax.f32 %v1440_v11, 0.0 }
 0x45b   : > { %1467 = vst.msk [vmem:[%s585_s21 + $0x38] sm:$0xff] %vm1459_vm0, %v1458_v49 }
 0x45c   : > { %1465 = vst.msk [vmem:[%s585_s21 + $0x28] sm:$0xff] %vm1459_vm0, %v1456_v51 }
 0x45d   : > { %2276 = shalt.err (!%p2273_p8)
}
 0x45e   : > { %s2277_s16 = scalar_lea.hbm %s3661_s26, 1024  ;;  %s2281_s14 = scalar_lea.hbm %s3906_s25, 8192 }
 0x45f   : > { %p2278_p1 = scmp.ne.s32.totalorder %s3661_s26, %s2277_s16  ;;  %p2282_p7 = scmp.lt.u32.totalorder %s3661_s26, %s3906_s25 }
 0x460   : > { %p2283_p5 = scmp.lt.u32.totalorder %s2281_s14, %s2277_s16  ;;  %p2285_p9 = scmp.lt.u32.totalorder %s2277_s16, %s3661_s26 }
 0x461   : > { %p2279_p10 = pnand %p2278_p1, %p3907_p4 }
 0x462   : > { %p2284_p2 = por %p2283_p5, %p2282_p7 }
 0x463   : > { %p2280_p12 = pneg %p2279_p10 }
 0x464   : > { %p2286_p13 = por %p2285_p9, %p2284_p2 }
 0x466   : > { %p2287_p0 = pnand %p2286_p13, %p2280_p12 }
 0x468   : > { %2290 = shalt.err (!%p2287_p0)
}
 0x469   : > { %s2368_s28 = smov 128   ;;  %s2369_s27 = smov 8  }
 0x46a   : > { %1830 = dma.vmem_to_hbm [thread:$0]  (%p3907_p4), %s3663_s3, 1024, %s3661_s26, %s1469_s22, %s2368_s28, %s2368_s28, %s2369_s27  }
 0x46b PF: > { %s3908_s21 = sld [smem:[#allocation29_spill]]  ;;  %s3909_s23 = sld [smem:[#allocation28_spill]] }
 0x46c   : > { %s3910_s13 = sld [smem:[#allocation35_spill]] }
 0x471   : > { %p1888_p6 = scmp.ge.s32.totalorder %s3908_s21, 2  ;;  %s1497_s15 = sand.u32 1, %s3909_s23  }
 0x472   : > { %p3911_p3 = scmp.ne.s32.totalorder %s3910_s13, 0  ;;  %s1498_s17 = scalar_lea.sflag [#allocation4], %s1497_s15 }
 0x474   : > { %p1868_p11 = pnand %p1888_p6, %p3911_p3 }
 0x476   : > { %2332 = dma.done.wait (!%p1868_p11), %s1498_s17, 1024  }
 0x477   : > { %2334 = vsyncadd (!%p1868_p11), %s1498_s17, 4294966272  ;;  %s3912_s20 = sld [smem:[#allocation31_spill]]  ;;  %s3913_s7 = sld [smem:[#allocation32_spill]] }
 0x478   : > { %s3914_s17 = smov %s2341_s18  ;;  %s3915_s18 = smov %s2345_s19 }
 0x47d   : > { %p31_p8 = scmp.ge.s32.totalorder %s3912_s20, 10   ;;  %s3916_s19 = smov %s3913_s7 }
 0x47f   :  { %33 = sbr.rel (!%p31_p8) target bundleno = 18 (0x12), region = 165 }
 0x486   :  { %1503 = vsyncpa [#allocation3], 1 }
 0x487   :  { %1505 = vsyncpa [#allocation3 + $0x1], 1 }
 0x488   :  { %1506 = vsyncpa [#allocation6], 1 }
 0x489   :  { %1508 = vsyncpa [#allocation6 + $0x1], 1 }
 0x48a   :  { %1509 = vsyncpa [#allocation9], 1 }
 0x48b   :  { %1510 = vsyncpa [#allocation12], 1 }
 0x48c   :  { %1511 = vsyncpa [#allocation15], 1 }
 0x48d   :  { %1512 = vsyncpa [#allocation18], 1 }
 0x48e   :  { %1513 = vsyncpa [#allocation4], 1 }
 0x48f   :  { %1515 = vsyncpa [#allocation4 + $0x1], 1 }

</bundles_post_ra>
